<compile_context>
chip_gen: v7x
topology: tpu7x:2x2x1
jax: 0.10.0
libtpu: 0.0.40
codegen_flags: <defaults>
</compile_context>

<pallas_src>
import math

import jax
import jax.numpy as jnp
from jax import lax
from jax.experimental import pallas as pl
from jax.experimental.pallas import tpu as pltpu

LANE = 128
_NEG_BIG = -1e30  # pad value for label-block bias -> exp() underflows to 0


def _round_up(n, m):
    return ((n + m - 1) // m) * m


def _pad_cols(a, width, value=0.0):
    pad = width - a.shape[1]
    if pad <= 0:
        return a
    return jnp.pad(a, ((0, 0), (0, pad)), constant_values=value)


# ----------------------------------------------------------------------------
# Kernel: both views' full forward pass, all operands resident in VMEM.
# Ref order (flat): x per view, (W,b)*n_enc per view, fused head (W,b) per
# view, feature_module[1] (W,b), remaining decoder (W,b)*n_dec_rest per view,
# then outputs: label_probs per view, recon per view, features_norm per view.
# ----------------------------------------------------------------------------
def make_ccmvc_kernel(n_views, n_enc, n_dec_rest, d_low, d_dec0, lbl_w, feat_w):
    def kernel(*refs):
        idx = 0
        xs = refs[idx:idx + n_views]; idx += n_views

        enc = []
        for _ in range(n_views):
            enc.append([(refs[idx + 2 * k], refs[idx + 2 * k + 1]) for k in range(n_enc)])
            idx += 2 * n_enc

        heads = [(refs[idx + 2 * v], refs[idx + 2 * v + 1]) for v in range(n_views)]
        idx += 2 * n_views

        feat1_w, feat1_b = refs[idx], refs[idx + 1]; idx += 2

        dec_rest = []
        for _ in range(n_views):
            dec_rest.append([(refs[idx + 2 * k], refs[idx + 2 * k + 1]) for k in range(n_dec_rest)])
            idx += 2 * n_dec_rest

        lbp_refs = refs[idx:idx + n_views]; idx += n_views
        rec_refs = refs[idx:idx + n_views]; idx += n_views
        ftn_refs = refs[idx:idx + n_views]; idx += n_views

        def linear(h, w_ref, b_ref):
            return jnp.dot(h, w_ref[...], preferred_element_type=jnp.float32) + b_ref[...]

        for v in range(n_views):
            # ---- encoder: Linear + ReLU after every layer ----
            h = xs[v][...].astype(jnp.float32)
            for (w_ref, b_ref) in enc[v]:
                h = jnp.maximum(linear(h, w_ref, b_ref), 0.0)
            high = h  # high_features

            # ---- fused head: [label | feature_module[0] | decoder[0]] blocks ----
            hw, hb = heads[v]
            head = linear(high, hw, hb)                      # (batch, lbl_w+feat_w+dec_w)
            logits = head[:, :lbl_w]                         # padded lanes hold -1e30
            fl_pre = head[:, lbl_w:lbl_w + d_low]            # lane-aligned slice
            dec_h = jnp.maximum(head[:, lbl_w + feat_w: lbl_w + feat_w + d_dec0], 0.0)

            # ---- label_learning_module: Softmax(dim=1), reciprocal on EUP ----
            m = jnp.max(logits, axis=1, keepdims=True)
            e = jnp.exp(logits - m)                          # pad lanes -> exactly 0
            lbp_refs[v][...] = e * pl.reciprocal(
                jnp.sum(e, axis=1, keepdims=True), approx=True)

            # ---- feature_module: 2nd Linear + L2 normalize (rsqrt on EUP) ----
            fl = linear(fl_pre, feat1_w, feat1_b)            # (batch, 1024)
            ssq = jnp.sum(fl * fl, axis=1, keepdims=True)
            # F.normalize: x / max(||x||, 1e-12)  ==  x * rsqrt(max(||x||^2, 1e-24))
            ftn_refs[v][...] = fl * lax.rsqrt(jnp.maximum(ssq, 1e-24))

            # ---- decoder tail: ReLU after every Linear (incl. the last, per spec) ----
            r = dec_h
            for (w_ref, b_ref) in dec_rest[v]:
                r = jnp.maximum(linear(r, w_ref, b_ref), 0.0)
            rec_refs[v][...] = r                             # (batch, 128-multiple)

    return kernel


# ----------------------------------------------------------------------------
# Wrapper: builds padded/fused weights once and calls one pallas_call.
# ----------------------------------------------------------------------------
def ccmvc_forward(data_views, params):
    """Matches CCMVCNetwork.forward: returns (lbps, dvs, features) lists."""
    enc, dec = params["enc"], params["dec"]
    feat, label = params["feat"], params["label"]

    n_views = len(data_views)
    batch = data_views[0].shape[0]
    in_dims = [int(x.shape[1]) for x in data_views]

    d_high, d_low = feat[0][0].shape
    nc = label[0][0].shape[1]
    d_dec0 = dec[0][0][0].shape[1]
    feat_out = feat[1][0].shape[1]
    n_enc = len(enc[0])
    n_dec = len(dec[0])
    assert n_dec >= 2, "decoder with a single layer not supported by this kernel"
    n_dec_rest = n_dec - 1

    lbl_w = _round_up(nc, LANE)
    feat_w = _round_up(d_low, LANE)
    dec_w = _round_up(d_dec0, LANE)
    rec_ws = [_round_up(d, LANE) for d in in_dims]

    flat = list(data_views)
    for v in range(n_views):
        for (w, b) in enc[v]:
            flat += [w, b]
    # Fused head weights (one matmul off `high` instead of three); each block
    # padded to a 128-lane boundary so in-kernel slices are lane-aligned.
    for v in range(n_views):
        hw = jnp.concatenate([
            _pad_cols(label[0][0], lbl_w),
            _pad_cols(feat[0][0], feat_w),
            _pad_cols(dec[v][0][0], dec_w)], axis=1)
        hb = jnp.concatenate([
            _pad_cols(label[0][1], lbl_w, _NEG_BIG),   # softmax pad lanes -> 0
            _pad_cols(feat[0][1], feat_w),
            _pad_cols(dec[v][0][1], dec_w)], axis=1)
        flat += [hw, hb]
    flat += [feat[1][0], feat[1][1]]
    for v in range(n_views):
        layers = list(dec[v][1:])
        lw, lb = layers[-1]
        layers[-1] = (_pad_cols(lw, rec_ws[v]), _pad_cols(lb, rec_ws[v]))  # lane-dense recon
        for (w, b) in layers:
            flat += [w, b]

    out_shapes = tuple(
        [jax.ShapeDtypeStruct((batch, lbl_w), jnp.float32) for _ in range(n_views)]
        + [jax.ShapeDtypeStruct((batch, rec_ws[v]), jnp.float32) for v in range(n_views)]
        + [jax.ShapeDtypeStruct((batch, feat_out), jnp.float32) for _ in range(n_views)]
    )

    kernel = make_ccmvc_kernel(n_views, n_enc, n_dec_rest, d_low, d_dec0, lbl_w, feat_w)

    def vmem_spec():
        return pl.BlockSpec(memory_space=pltpu.MemorySpace.VMEM)

    # TODO(synk): for large batches add a batch grid axis (tile_m, D) marked
    # "parallel" (shards across v7x's 2 TensorCores and enables pipelining);
    # at batch=8 a grid-less single invocation is fastest.
    outs = pl.pallas_call(
        kernel,
        out_shape=out_shapes,
        in_specs=[vmem_spec() for _ in flat],
        out_specs=tuple(vmem_spec() for _ in out_shapes),
    )(*flat)

    lbps = [outs[v][:, :nc] for v in range(n_views)]
    dvs = [outs[n_views + v][:, :in_dims[v]] for v in range(n_views)]
    features = [outs[2 * n_views + v] for v in range(n_views)]
    return lbps, dvs, features


# ----------------------------------------------------------------------------
# Deterministic parameter construction (PyTorch nn.Linear-style uniform init).
# ----------------------------------------------------------------------------
def init_linear(key, d_in, d_out):
    kw, kb = jax.random.split(key)
    bound = 1.0 / math.sqrt(d_in)
    w = jax.random.uniform(kw, (d_in, d_out), jnp.float32, -bound, bound)
    b = jax.random.uniform(kb, (1, d_out), jnp.float32, -bound, bound)
    return (w, b)


def init_mlp(key, sizes):
    layers = []
    for i in range(len(sizes) - 1):
        key, k = jax.random.split(key)
        layers.append(init_linear(k, sizes[i], sizes[i + 1]))
    return layers, key


def init_params(key, num_views, input_sizes, dims, dim_high, dim_low, num_clusters):
    params = {"enc": [], "dec": []}
    for v in range(num_views):
        enc_sizes = [input_sizes[v]] + list(dims) + [dim_high]
        dec_sizes = [dim_high] + list(reversed(dims)) + [input_sizes[v]]
        e, key = init_mlp(key, enc_sizes)
        d, key = init_mlp(key, dec_sizes)
        params["enc"].append(e)
        params["dec"].append(d)
    feat, key = init_mlp(key, [dim_high, dim_low, 1024])
    label, key = init_mlp(key, [dim_high, num_clusters])
    params["feat"] = feat
    params["label"] = label
    return params, key


# TODO(synk): forward_plot1 (torch.linalg.eig, kmeans, Hungarian matching) has
# no clean Pallas equivalent and is intentionally not implemented; only the
# standard forward() path is translated.

if __name__ == "__main__":
    key = jax.random.PRNGKey(0)

    num_views = 2
    input_sizes = [16, 20]
    dims = [32, 24]
    dim_high_feature = 32
    dim_low_feature = 16
    num_clusters = 4
    batch = 8

    params, key = init_params(
        key, num_views, input_sizes, dims, dim_high_feature, dim_low_feature, num_clusters
    )

    data_views = []
    for v in range(num_views):
        key, k = jax.random.split(key)
        data_views.append(
            jax.random.normal(k, (batch, input_sizes[v]), dtype=jnp.float32)
        )

    lbps, dvs, features = ccmvc_forward(data_views, params)
    jax.block_until_ready((lbps, dvs, features))

    # sanity checks: shapes + finiteness + softmax rows ~sum to 1
    assert lbps[0].shape == (batch, num_clusters)
    assert lbps[1].shape == (batch, num_clusters)
    assert dvs[0].shape == (batch, input_sizes[0])
    assert dvs[1].shape == (batch, input_sizes[1])
    assert features[0].shape == (batch, 1024)
    assert features[1].shape == (batch, 1024)
    for arr in lbps + dvs + features:
        assert bool(jnp.all(jnp.isfinite(arr)))
    assert bool(jnp.all(jnp.abs(jnp.sum(lbps[0], axis=1) - 1.0) < 1e-2))

    print("KERNEL_OK")
</pallas_src>

<mosaic_0001>
module attributes {stable_mosaic.version = 11 : i64} {
  func.func @kernel(%arg0: memref<8x16xf32, #tpu.memory_space<vmem>>, %arg1: memref<8x20xf32, #tpu.memory_space<vmem>>, %arg2: memref<16x32xf32, #tpu.memory_space<vmem>>, %arg3: memref<1x32xf32, #tpu.memory_space<vmem>>, %arg4: memref<32x24xf32, #tpu.memory_space<vmem>>, %arg5: memref<1x24xf32, #tpu.memory_space<vmem>>, %arg6: memref<24x32xf32, #tpu.memory_space<vmem>>, %arg7: memref<1x32xf32, #tpu.memory_space<vmem>>, %arg8: memref<20x32xf32, #tpu.memory_space<vmem>>, %arg9: memref<1x32xf32, #tpu.memory_space<vmem>>, %arg10: memref<32x24xf32, #tpu.memory_space<vmem>>, %arg11: memref<1x24xf32, #tpu.memory_space<vmem>>, %arg12: memref<24x32xf32, #tpu.memory_space<vmem>>, %arg13: memref<1x32xf32, #tpu.memory_space<vmem>>, %arg14: memref<32x384xf32, #tpu.memory_space<vmem>>, %arg15: memref<1x384xf32, #tpu.memory_space<vmem>>, %arg16: memref<32x384xf32, #tpu.memory_space<vmem>>, %arg17: memref<1x384xf32, #tpu.memory_space<vmem>>, %arg18: memref<16x1024xf32, #tpu.memory_space<vmem>>, %arg19: memref<1x1024xf32, #tpu.memory_space<vmem>>, %arg20: memref<24x32xf32, #tpu.memory_space<vmem>>, %arg21: memref<1x32xf32, #tpu.memory_space<vmem>>, %arg22: memref<32x128xf32, #tpu.memory_space<vmem>>, %arg23: memref<1x128xf32, #tpu.memory_space<vmem>>, %arg24: memref<24x32xf32, #tpu.memory_space<vmem>>, %arg25: memref<1x32xf32, #tpu.memory_space<vmem>>, %arg26: memref<32x128xf32, #tpu.memory_space<vmem>>, %arg27: memref<1x128xf32, #tpu.memory_space<vmem>>, %arg28: memref<8x128xf32, #tpu.memory_space<vmem>>, %arg29: memref<8x128xf32, #tpu.memory_space<vmem>>, %arg30: memref<8x128xf32, #tpu.memory_space<vmem>>, %arg31: memref<8x128xf32, #tpu.memory_space<vmem>>, %arg32: memref<8x1024xf32, #tpu.memory_space<vmem>>, %arg33: memref<8x1024xf32, #tpu.memory_space<vmem>>) attributes {dimension_semantics = [], scalar_prefetch = 0 : i64, scratch_operands = 0 : i64, tpu.core_type = #tpu.core_type<tc>} {
    %c0 = arith.constant 0 : index
    %c0_0 = arith.constant 0 : index
    %0 = vector.load %arg0[%c0, %c0_0] : memref<8x16xf32, #tpu.memory_space<vmem>>, vector<8x16xf32>
    %c0_1 = arith.constant 0 : index
    %c0_2 = arith.constant 0 : index
    %1 = vector.load %arg2[%c0_1, %c0_2] : memref<16x32xf32, #tpu.memory_space<vmem>>, vector<16x32xf32>
    %cst = arith.constant dense<0.000000e+00> : vector<8x32xf32>
    %2 = tpu.matmul %0, %1, %cst {dimension_numbers = #tpu.dot_dimension_numbers<[1], [0], [0], [1], [0, 0, 1, 1], [], []>} : vector<8x16xf32>, vector<16x32xf32>, vector<8x32xf32> -> vector<8x32xf32>
    %c0_3 = arith.constant 0 : index
    %c0_4 = arith.constant 0 : index
    %3 = vector.load %arg3[%c0_3, %c0_4] : memref<1x32xf32, #tpu.memory_space<vmem>>, vector<1x32xf32>
    %4 = vector.broadcast %3 : vector<1x32xf32> to vector<8x32xf32>
    %5 = arith.addf %2, %4 : vector<8x32xf32>
    %cst_5 = arith.constant 0.000000e+00 : f32
    %6 = vector.broadcast %cst_5 : f32 to vector<8x32xf32>
    %7 = arith.maximumf %5, %6 : vector<8x32xf32>
    %c0_6 = arith.constant 0 : index
    %c0_7 = arith.constant 0 : index
    %8 = vector.load %arg4[%c0_6, %c0_7] : memref<32x24xf32, #tpu.memory_space<vmem>>, vector<32x24xf32>
    %cst_8 = arith.constant dense<0.000000e+00> : vector<8x24xf32>
    %9 = tpu.matmul %7, %8, %cst_8 {dimension_numbers = #tpu.dot_dimension_numbers<[1], [0], [0], [1], [0, 0, 1, 1], [], []>} : vector<8x32xf32>, vector<32x24xf32>, vector<8x24xf32> -> vector<8x24xf32>
    %c0_9 = arith.constant 0 : index
    %c0_10 = arith.constant 0 : index
    %10 = vector.load %arg5[%c0_9, %c0_10] : memref<1x24xf32, #tpu.memory_space<vmem>>, vector<1x24xf32>
    %11 = vector.broadcast %10 : vector<1x24xf32> to vector<8x24xf32>
    %12 = arith.addf %9, %11 : vector<8x24xf32>
    %cst_11 = arith.constant 0.000000e+00 : f32
    %13 = vector.broadcast %cst_11 : f32 to vector<8x24xf32>
    %14 = arith.maximumf %12, %13 : vector<8x24xf32>
    %c0_12 = arith.constant 0 : index
    %c0_13 = arith.constant 0 : index
    %15 = vector.load %arg6[%c0_12, %c0_13] : memref<24x32xf32, #tpu.memory_space<vmem>>, vector<24x32xf32>
    %cst_14 = arith.constant dense<0.000000e+00> : vector<8x32xf32>
    %16 = tpu.matmul %14, %15, %cst_14 {dimension_numbers = #tpu.dot_dimension_numbers<[1], [0], [0], [1], [0, 0, 1, 1], [], []>} : vector<8x24xf32>, vector<24x32xf32>, vector<8x32xf32> -> vector<8x32xf32>
    %c0_15 = arith.constant 0 : index
    %c0_16 = arith.constant 0 : index
    %17 = vector.load %arg7[%c0_15, %c0_16] : memref<1x32xf32, #tpu.memory_space<vmem>>, vector<1x32xf32>
    %18 = vector.broadcast %17 : vector<1x32xf32> to vector<8x32xf32>
    %19 = arith.addf %16, %18 : vector<8x32xf32>
    %cst_17 = arith.constant 0.000000e+00 : f32
    %20 = vector.broadcast %cst_17 : f32 to vector<8x32xf32>
    %21 = arith.maximumf %19, %20 : vector<8x32xf32>
    %c0_18 = arith.constant 0 : index
    %c0_19 = arith.constant 0 : index
    %22 = vector.load %arg14[%c0_18, %c0_19] : memref<32x384xf32, #tpu.memory_space<vmem>>, vector<32x384xf32>
    %cst_20 = arith.constant dense<0.000000e+00> : vector<8x384xf32>
    %23 = tpu.matmul %21, %22, %cst_20 {dimension_numbers = #tpu.dot_dimension_numbers<[1], [0], [0], [1], [0, 0, 1, 1], [], []>} : vector<8x32xf32>, vector<32x384xf32>, vector<8x384xf32> -> vector<8x384xf32>
    %c0_21 = arith.constant 0 : index
    %c0_22 = arith.constant 0 : index
    %24 = vector.load %arg15[%c0_21, %c0_22] : memref<1x384xf32, #tpu.memory_space<vmem>>, vector<1x384xf32>
    %25 = vector.broadcast %24 : vector<1x384xf32> to vector<8x384xf32>
    %26 = arith.addf %23, %25 : vector<8x384xf32>
    %27 = vector.extract_strided_slice %26 {offsets = [0, 0], sizes = [8, 128], strides = [1, 1]} : vector<8x384xf32> to vector<8x128xf32>
    %28 = vector.extract_strided_slice %26 {offsets = [0, 128], sizes = [8, 16], strides = [1, 1]} : vector<8x384xf32> to vector<8x16xf32>
    %29 = vector.extract_strided_slice %26 {offsets = [0, 256], sizes = [8, 24], strides = [1, 1]} : vector<8x384xf32> to vector<8x24xf32>
    %cst_23 = arith.constant 0.000000e+00 : f32
    %30 = vector.broadcast %cst_23 : f32 to vector<8x24xf32>
    %31 = arith.maximumf %29, %30 : vector<8x24xf32>
    %cst_24 = arith.constant dense<0xFF800000> : vector<8xf32>
    %32 = vector.multi_reduction <maximumf>, %27, %cst_24 [1] : vector<8x128xf32> to vector<8xf32>
    %33 = vector.shape_cast %32 : vector<8xf32> to vector<8x1xf32>
    %34 = vector.broadcast %33 : vector<8x1xf32> to vector<8x128xf32>
    %35 = arith.subf %27, %34 : vector<8x128xf32>
    %36 = math.exp %35 : vector<8x128xf32>
    %cst_25 = arith.constant dense<0.000000e+00> : vector<8xf32>
    %37 = vector.multi_reduction <add>, %36, %cst_25 [1] : vector<8x128xf32> to vector<8xf32>
    %38 = vector.shape_cast %37 : vector<8xf32> to vector<8x1xf32>
    %39 = tpu.reciprocal %38 {approx = true} : vector<8x1xf32> -> vector<8x1xf32>
    %40 = vector.broadcast %39 : vector<8x1xf32> to vector<8x128xf32>
    %41 = arith.mulf %36, %40 : vector<8x128xf32>
    %c0_26 = arith.constant 0 : index
    %c0_27 = arith.constant 0 : index
    %42 = vector.load %arg28[%c0_26, %c0_27] : memref<8x128xf32, #tpu.memory_space<vmem>>, vector<8x128xf32>
    tpu.vector_store %arg28[%c0_26, %c0_27], %41 {strides = array<i32>} : memref<8x128xf32, #tpu.memory_space<vmem>>, vector<8x128xf32>,
    %c0_28 = arith.constant 0 : index
    %c0_29 = arith.constant 0 : index
    %43 = vector.load %arg18[%c0_28, %c0_29] : memref<16x1024xf32, #tpu.memory_space<vmem>>, vector<16x1024xf32>
    %cst_30 = arith.constant dense<0.000000e+00> : vector<8x1024xf32>
    %44 = tpu.matmul %28, %43, %cst_30 {dimension_numbers = #tpu.dot_dimension_numbers<[1], [0], [0], [1], [0, 0, 1, 1], [], []>} : vector<8x16xf32>, vector<16x1024xf32>, vector<8x1024xf32> -> vector<8x1024xf32>
    %c0_31 = arith.constant 0 : index
    %c0_32 = arith.constant 0 : index
    %45 = vector.load %arg19[%c0_31, %c0_32] : memref<1x1024xf32, #tpu.memory_space<vmem>>, vector<1x1024xf32>
    %46 = vector.broadcast %45 : vector<1x1024xf32> to vector<8x1024xf32>
    %47 = arith.addf %44, %46 : vector<8x1024xf32>
    %48 = arith.mulf %47, %47 : vector<8x1024xf32>
    %cst_33 = arith.constant dense<0.000000e+00> : vector<8xf32>
    %49 = vector.multi_reduction <add>, %48, %cst_33 [1] : vector<8x1024xf32> to vector<8xf32>
    %50 = vector.shape_cast %49 : vector<8xf32> to vector<8x1xf32>
    %cst_34 = arith.constant 1.000000e-24 : f32
    %51 = vector.broadcast %cst_34 : f32 to vector<8x1xf32>
    %52 = arith.maximumf %50, %51 : vector<8x1xf32>
    %53 = math.rsqrt %52 : vector<8x1xf32>
    %54 = vector.broadcast %53 : vector<8x1xf32> to vector<8x1024xf32>
    %55 = arith.mulf %47, %54 : vector<8x1024xf32>
    %c0_35 = arith.constant 0 : index
    %c0_36 = arith.constant 0 : index
    %56 = vector.load %arg32[%c0_35, %c0_36] : memref<8x1024xf32, #tpu.memory_space<vmem>>, vector<8x1024xf32>
    tpu.vector_store %arg32[%c0_35, %c0_36], %55 {strides = array<i32>} : memref<8x1024xf32, #tpu.memory_space<vmem>>, vector<8x1024xf32>,
    %c0_37 = arith.constant 0 : index
    %c0_38 = arith.constant 0 : index
    %57 = vector.load %arg20[%c0_37, %c0_38] : memref<24x32xf32, #tpu.memory_space<vmem>>, vector<24x32xf32>
    %cst_39 = arith.constant dense<0.000000e+00> : vector<8x32xf32>
    %58 = tpu.matmul %31, %57, %cst_39 {dimension_numbers = #tpu.dot_dimension_numbers<[1], [0], [0], [1], [0, 0, 1, 1], [], []>} : vector<8x24xf32>, vector<24x32xf32>, vector<8x32xf32> -> vector<8x32xf32>
    %c0_40 = arith.constant 0 : index
    %c0_41 = arith.constant 0 : index
    %59 = vector.load %arg21[%c0_40, %c0_41] : memref<1x32xf32, #tpu.memory_space<vmem>>, vector<1x32xf32>
    %60 = vector.broadcast %59 : vector<1x32xf32> to vector<8x32xf32>
    %61 = arith.addf %58, %60 : vector<8x32xf32>
    %cst_42 = arith.constant 0.000000e+00 : f32
    %62 = vector.broadcast %cst_42 : f32 to vector<8x32xf32>
    %63 = arith.maximumf %61, %62 : vector<8x32xf32>
    %c0_43 = arith.constant 0 : index
    %c0_44 = arith.constant 0 : index
    %64 = vector.load %arg22[%c0_43, %c0_44] : memref<32x128xf32, #tpu.memory_space<vmem>>, vector<32x128xf32>
    %cst_45 = arith.constant dense<0.000000e+00> : vector<8x128xf32>
    %65 = tpu.matmul %63, %64, %cst_45 {dimension_numbers = #tpu.dot_dimension_numbers<[1], [0], [0], [1], [0, 0, 1, 1], [], []>} : vector<8x32xf32>, vector<32x128xf32>, vector<8x128xf32> -> vector<8x128xf32>
    %c0_46 = arith.constant 0 : index
    %c0_47 = arith.constant 0 : index
    %66 = vector.load %arg23[%c0_46, %c0_47] : memref<1x128xf32, #tpu.memory_space<vmem>>, vector<1x128xf32>
    %67 = vector.broadcast %66 : vector<1x128xf32> to vector<8x128xf32>
    %68 = arith.addf %65, %67 : vector<8x128xf32>
    %cst_48 = arith.constant 0.000000e+00 : f32
    %69 = vector.broadcast %cst_48 : f32 to vector<8x128xf32>
    %70 = arith.maximumf %68, %69 : vector<8x128xf32>
    %c0_49 = arith.constant 0 : index
    %c0_50 = arith.constant 0 : index
    %71 = vector.load %arg30[%c0_49, %c0_50] : memref<8x128xf32, #tpu.memory_space<vmem>>, vector<8x128xf32>
    tpu.vector_store %arg30[%c0_49, %c0_50], %70 {strides = array<i32>} : memref<8x128xf32, #tpu.memory_space<vmem>>, vector<8x128xf32>,
    %c0_51 = arith.constant 0 : index
    %c0_52 = arith.constant 0 : index
    %72 = vector.load %arg1[%c0_51, %c0_52] : memref<8x20xf32, #tpu.memory_space<vmem>>, vector<8x20xf32>
    %c0_53 = arith.constant 0 : index
    %c0_54 = arith.constant 0 : index
    %73 = vector.load %arg8[%c0_53, %c0_54] : memref<20x32xf32, #tpu.memory_space<vmem>>, vector<20x32xf32>
    %cst_55 = arith.constant dense<0.000000e+00> : vector<8x32xf32>
    %74 = tpu.matmul %72, %73, %cst_55 {dimension_numbers = #tpu.dot_dimension_numbers<[1], [0], [0], [1], [0, 0, 1, 1], [], []>} : vector<8x20xf32>, vector<20x32xf32>, vector<8x32xf32> -> vector<8x32xf32>
    %c0_56 = arith.constant 0 : index
    %c0_57 = arith.constant 0 : index
    %75 = vector.load %arg9[%c0_56, %c0_57] : memref<1x32xf32, #tpu.memory_space<vmem>>, vector<1x32xf32>
    %76 = vector.broadcast %75 : vector<1x32xf32> to vector<8x32xf32>
    %77 = arith.addf %74, %76 : vector<8x32xf32>
    %cst_58 = arith.constant 0.000000e+00 : f32
    %78 = vector.broadcast %cst_58 : f32 to vector<8x32xf32>
    %79 = arith.maximumf %77, %78 : vector<8x32xf32>
    %c0_59 = arith.constant 0 : index
    %c0_60 = arith.constant 0 : index
    %80 = vector.load %arg10[%c0_59, %c0_60] : memref<32x24xf32, #tpu.memory_space<vmem>>, vector<32x24xf32>
    %cst_61 = arith.constant dense<0.000000e+00> : vector<8x24xf32>
    %81 = tpu.matmul %79, %80, %cst_61 {dimension_numbers = #tpu.dot_dimension_numbers<[1], [0], [0], [1], [0, 0, 1, 1], [], []>} : vector<8x32xf32>, vector<32x24xf32>, vector<8x24xf32> -> vector<8x24xf32>
    %c0_62 = arith.constant 0 : index
    %c0_63 = arith.constant 0 : index
    %82 = vector.load %arg11[%c0_62, %c0_63] : memref<1x24xf32, #tpu.memory_space<vmem>>, vector<1x24xf32>
    %83 = vector.broadcast %82 : vector<1x24xf32> to vector<8x24xf32>
    %84 = arith.addf %81, %83 : vector<8x24xf32>
    %cst_64 = arith.constant 0.000000e+00 : f32
    %85 = vector.broadcast %cst_64 : f32 to vector<8x24xf32>
    %86 = arith.maximumf %84, %85 : vector<8x24xf32>
    %c0_65 = arith.constant 0 : index
    %c0_66 = arith.constant 0 : index
    %87 = vector.load %arg12[%c0_65, %c0_66] : memref<24x32xf32, #tpu.memory_space<vmem>>, vector<24x32xf32>
    %cst_67 = arith.constant dense<0.000000e+00> : vector<8x32xf32>
    %88 = tpu.matmul %86, %87, %cst_67 {dimension_numbers = #tpu.dot_dimension_numbers<[1], [0], [0], [1], [0, 0, 1, 1], [], []>} : vector<8x24xf32>, vector<24x32xf32>, vector<8x32xf32> -> vector<8x32xf32>
    %c0_68 = arith.constant 0 : index
    %c0_69 = arith.constant 0 : index
    %89 = vector.load %arg13[%c0_68, %c0_69] : memref<1x32xf32, #tpu.memory_space<vmem>>, vector<1x32xf32>
    %90 = vector.broadcast %89 : vector<1x32xf32> to vector<8x32xf32>
    %91 = arith.addf %88, %90 : vector<8x32xf32>
    %cst_70 = arith.constant 0.000000e+00 : f32
    %92 = vector.broadcast %cst_70 : f32 to vector<8x32xf32>
    %93 = arith.maximumf %91, %92 : vector<8x32xf32>
    %c0_71 = arith.constant 0 : index
    %c0_72 = arith.constant 0 : index
    %94 = vector.load %arg16[%c0_71, %c0_72] : memref<32x384xf32, #tpu.memory_space<vmem>>, vector<32x384xf32>
    %cst_73 = arith.constant dense<0.000000e+00> : vector<8x384xf32>
    %95 = tpu.matmul %93, %94, %cst_73 {dimension_numbers = #tpu.dot_dimension_numbers<[1], [0], [0], [1], [0, 0, 1, 1], [], []>} : vector<8x32xf32>, vector<32x384xf32>, vector<8x384xf32> -> vector<8x384xf32>
    %c0_74 = arith.constant 0 : index
    %c0_75 = arith.constant 0 : index
    %96 = vector.load %arg17[%c0_74, %c0_75] : memref<1x384xf32, #tpu.memory_space<vmem>>, vector<1x384xf32>
    %97 = vector.broadcast %96 : vector<1x384xf32> to vector<8x384xf32>
    %98 = arith.addf %95, %97 : vector<8x384xf32>
    %99 = vector.extract_strided_slice %98 {offsets = [0, 0], sizes = [8, 128], strides = [1, 1]} : vector<8x384xf32> to vector<8x128xf32>
    %100 = vector.extract_strided_slice %98 {offsets = [0, 128], sizes = [8, 16], strides = [1, 1]} : vector<8x384xf32> to vector<8x16xf32>
    %101 = vector.extract_strided_slice %98 {offsets = [0, 256], sizes = [8, 24], strides = [1, 1]} : vector<8x384xf32> to vector<8x24xf32>
    %cst_76 = arith.constant 0.000000e+00 : f32
    %102 = vector.broadcast %cst_76 : f32 to vector<8x24xf32>
    %103 = arith.maximumf %101, %102 : vector<8x24xf32>
    %cst_77 = arith.constant dense<0xFF800000> : vector<8xf32>
    %104 = vector.multi_reduction <maximumf>, %99, %cst_77 [1] : vector<8x128xf32> to vector<8xf32>
    %105 = vector.shape_cast %104 : vector<8xf32> to vector<8x1xf32>
    %106 = vector.broadcast %105 : vector<8x1xf32> to vector<8x128xf32>
    %107 = arith.subf %99, %106 : vector<8x128xf32>
    %108 = math.exp %107 : vector<8x128xf32>
    %cst_78 = arith.constant dense<0.000000e+00> : vector<8xf32>
    %109 = vector.multi_reduction <add>, %108, %cst_78 [1] : vector<8x128xf32> to vector<8xf32>
    %110 = vector.shape_cast %109 : vector<8xf32> to vector<8x1xf32>
    %111 = tpu.reciprocal %110 {approx = true} : vector<8x1xf32> -> vector<8x1xf32>
    %112 = vector.broadcast %111 : vector<8x1xf32> to vector<8x128xf32>
    %113 = arith.mulf %108, %112 : vector<8x128xf32>
    %c0_79 = arith.constant 0 : index
    %c0_80 = arith.constant 0 : index
    %114 = vector.load %arg29[%c0_79, %c0_80] : memref<8x128xf32, #tpu.memory_space<vmem>>, vector<8x128xf32>
    tpu.vector_store %arg29[%c0_79, %c0_80], %113 {strides = array<i32>} : memref<8x128xf32, #tpu.memory_space<vmem>>, vector<8x128xf32>,
    %c0_81 = arith.constant 0 : index
    %c0_82 = arith.constant 0 : index
    %115 = vector.load %arg18[%c0_81, %c0_82] : memref<16x1024xf32, #tpu.memory_space<vmem>>, vector<16x1024xf32>
    %cst_83 = arith.constant dense<0.000000e+00> : vector<8x1024xf32>
    %116 = tpu.matmul %100, %115, %cst_83 {dimension_numbers = #tpu.dot_dimension_numbers<[1], [0], [0], [1], [0, 0, 1, 1], [], []>} : vector<8x16xf32>, vector<16x1024xf32>, vector<8x1024xf32> -> vector<8x1024xf32>
    %c0_84 = arith.constant 0 : index
    %c0_85 = arith.constant 0 : index
    %117 = vector.load %arg19[%c0_84, %c0_85] : memref<1x1024xf32, #tpu.memory_space<vmem>>, vector<1x1024xf32>
    %118 = vector.broadcast %117 : vector<1x1024xf32> to vector<8x1024xf32>
    %119 = arith.addf %116, %118 : vector<8x1024xf32>
    %120 = arith.mulf %119, %119 : vector<8x1024xf32>
    %cst_86 = arith.constant dense<0.000000e+00> : vector<8xf32>
    %121 = vector.multi_reduction <add>, %120, %cst_86 [1] : vector<8x1024xf32> to vector<8xf32>
    %122 = vector.shape_cast %121 : vector<8xf32> to vector<8x1xf32>
    %cst_87 = arith.constant 1.000000e-24 : f32
    %123 = vector.broadcast %cst_87 : f32 to vector<8x1xf32>
    %124 = arith.maximumf %122, %123 : vector<8x1xf32>
    %125 = math.rsqrt %124 : vector<8x1xf32>
    %126 = vector.broadcast %125 : vector<8x1xf32> to vector<8x1024xf32>
    %127 = arith.mulf %119, %126 : vector<8x1024xf32>
    %c0_88 = arith.constant 0 : index
    %c0_89 = arith.constant 0 : index
    %128 = vector.load %arg33[%c0_88, %c0_89] : memref<8x1024xf32, #tpu.memory_space<vmem>>, vector<8x1024xf32>
    tpu.vector_store %arg33[%c0_88, %c0_89], %127 {strides = array<i32>} : memref<8x1024xf32, #tpu.memory_space<vmem>>, vector<8x1024xf32>,
    %c0_90 = arith.constant 0 : index
    %c0_91 = arith.constant 0 : index
    %129 = vector.load %arg24[%c0_90, %c0_91] : memref<24x32xf32, #tpu.memory_space<vmem>>, vector<24x32xf32>
    %cst_92 = arith.constant dense<0.000000e+00> : vector<8x32xf32>
    %130 = tpu.matmul %103, %129, %cst_92 {dimension_numbers = #tpu.dot_dimension_numbers<[1], [0], [0], [1], [0, 0, 1, 1], [], []>} : vector<8x24xf32>, vector<24x32xf32>, vector<8x32xf32> -> vector<8x32xf32>
    %c0_93 = arith.constant 0 : index
    %c0_94 = arith.constant 0 : index
    %131 = vector.load %arg25[%c0_93, %c0_94] : memref<1x32xf32, #tpu.memory_space<vmem>>, vector<1x32xf32>
    %132 = vector.broadcast %131 : vector<1x32xf32> to vector<8x32xf32>
    %133 = arith.addf %130, %132 : vector<8x32xf32>
    %cst_95 = arith.constant 0.000000e+00 : f32
    %134 = vector.broadcast %cst_95 : f32 to vector<8x32xf32>
    %135 = arith.maximumf %133, %134 : vector<8x32xf32>
    %c0_96 = arith.constant 0 : index
    %c0_97 = arith.constant 0 : index
    %136 = vector.load %arg26[%c0_96, %c0_97] : memref<32x128xf32, #tpu.memory_space<vmem>>, vector<32x128xf32>
    %cst_98 = arith.constant dense<0.000000e+00> : vector<8x128xf32>
    %137 = tpu.matmul %135, %136, %cst_98 {dimension_numbers = #tpu.dot_dimension_numbers<[1], [0], [0], [1], [0, 0, 1, 1], [], []>} : vector<8x32xf32>, vector<32x128xf32>, vector<8x128xf32> -> vector<8x128xf32>
    %c0_99 = arith.constant 0 : index
    %c0_100 = arith.constant 0 : index
    %138 = vector.load %arg27[%c0_99, %c0_100] : memref<1x128xf32, #tpu.memory_space<vmem>>, vector<1x128xf32>
    %139 = vector.broadcast %138 : vector<1x128xf32> to vector<8x128xf32>
    %140 = arith.addf %137, %139 : vector<8x128xf32>
    %cst_101 = arith.constant 0.000000e+00 : f32
    %141 = vector.broadcast %cst_101 : f32 to vector<8x128xf32>
    %142 = arith.maximumf %140, %141 : vector<8x128xf32>
    %c0_102 = arith.constant 0 : index
    %c0_103 = arith.constant 0 : index
    %143 = vector.load %arg31[%c0_102, %c0_103] : memref<8x128xf32, #tpu.memory_space<vmem>>, vector<8x128xf32>
    tpu.vector_store %arg31[%c0_102, %c0_103], %142 {strides = array<i32>} : memref<8x128xf32, #tpu.memory_space<vmem>>, vector<8x128xf32>,
    return
  }
}

</mosaic_0001>

<bundles_post_ra>
// kernel: tpu_custom_call.1
= control target key start
LH: loop header
LB: loop body
LE: loop exit
PB: predicated region body
PF: predicated region fallthrough
CT: control target
= control target key end

     0   :  { %s3437_s6 = smov 1   ;;  %s3438_s10 = smov 2   ;;  %s4105_s0 = inlined_call_operand.smem [shape: u32[34], index: -1, kind: input, shape index: {}] }
   0x1   :  { %s3510_s5 = sld [smem:[%s4105_s0]]   ;;  %s3439_s14 = smov 3  }
   0x2   :  { %s3515_s9 = sld [smem:[%s4105_s0 + %s3437_s6]]   ;;  %s3440_s18 = smov 4  }
   0x3   :  { %s3520_s13 = sld [smem:[%s4105_s0 + %s3438_s10]]   ;;  %s3441_s22 = smov 5  }
   0x4   :  { %s3525_s17 = sld [smem:[%s4105_s0 + %s3439_s14]]   ;;  %s3442_s26 = smov 6  }
   0x5   :  { %s3530_s21 = sld [smem:[%s4105_s0 + %s3440_s18]]   ;;  %s3443_s30 = smov 7  }
   0x6   :  { %s3535_s25 = sld [smem:[%s4105_s0 + %s3441_s22]]   ;;  %s3444_s4 = smov 8  }
   0x7   :  { %s3540_s29 = sld [smem:[%s4105_s0 + %s3442_s26]]   ;;  %s3445_s10 = smov 9  }
   0x8   :  { %s3545_s3 = sld [smem:[%s4105_s0 + %s3443_s30]]   ;;  %s3446_s15 = smov 10  }
   0x9   :  { %s3550_s8 = sld [smem:[%s4105_s0 + %s3444_s4]]   ;;  %s3447_s20 = smov 11  }
   0xa   :  { %s3555_s14 = sld [smem:[%s4105_s0 + %s3445_s10]]   ;;  %s3448_s26 = smov 12  }
   0xb   :  { %4118 = sst [smem:[#allocation55_spill]] %s3530_s21  ;;  %s3449_s1 = smov 13  }
   0xc   :  { %s3560_s19 = sld [smem:[%s4105_s0 + %s3446_s15]]   ;;  %s3450_s7 = smov 14  }
   0xd   :  { %s3565_s24 = sld [smem:[%s4105_s0 + %s3447_s20]]   ;;  %s3451_s15 = smov 15  }
   0xe   :  { %s3570_s30 = sld [smem:[%s4105_s0 + %s3448_s26]]   ;;  %s3452_s22 = smov 16  }
   0xf   :  { %s3575_s6 = sld [smem:[%s4105_s0 + %s3449_s1]]   ;;  %s3453_s28 = smov 17  }
  0x10   :  { %s3580_s12 = sld [smem:[%s4105_s0 + %s3450_s7]]   ;;  %s3454_s7 = smov 18  }
  0x11   :  { %s3585_s20 = sld [smem:[%s4105_s0 + %s3451_s15]]   ;;  %s3455_s15 = smov 19  }
  0x12   :  { %4119 = sst [smem:[#allocation56_spill]] %s3560_s19 }
  0x13   :  { %s3590_s27 = sld [smem:[%s4105_s0 + %s3452_s22]]   ;;  %s3456_s22 = smov 20  }
  0x14   :  { %4120 = sst [smem:[#allocation57_spill]] %s3570_s30 }
  0x15   :  { %s3595_s4 = sld [smem:[%s4105_s0 + %s3453_s28]]   ;;  %s3457_s28 = smov 21  }
  0x16   :  { %4121 = sst [smem:[#allocation58_spill]] %s3580_s12 }
  0x17   :  { %4122 = sst [smem:[#allocation59_spill]] %s3585_s20 }
  0x18   :  { %s3600_s19 = sld [smem:[%s4105_s0 + %s3454_s7]]   ;;  %s3458_s7 = smov 22  }
  0x19   :  { %s3605_s20 = sld [smem:[%s4105_s0 + %s3455_s15]]   ;;  %s3459_s15 = smov 23  }
  0x1a   :  { %s3610_s21 = sld [smem:[%s4105_s0 + %s3456_s22]]   ;;  %s3460_s22 = smov 24  }
  0x1b   :  { %4123 = sst [smem:[#allocation60_spill]] %s3595_s4 }
  0x1c   :  { %s3615_s4 = sld [smem:[%s4105_s0 + %s3457_s28]]   ;;  %s3461_s28 = smov 25  }
  0x1d   :  { %s3625_s12 = sld [smem:[%s4105_s0 + %s3459_s15]]   ;;  %s3463_s15 = smov 27  }
  0x1e   :  { %4124 = sst [smem:[#allocation61_spill]] %s3600_s19 }
  0x1f   :  { %s3620_s19 = sld [smem:[%s4105_s0 + %s3458_s7]]   ;;  %s3462_s7 = smov 26  }
  0x20   :  { %4125 = sst [smem:[#allocation62_spill]] %s3610_s21 }
  0x21   :  { %s3630_s21 = sld [smem:[%s4105_s0 + %s3460_s22]]   ;;  %s3464_s22 = smov 28  }
  0x22   :  { %s3635_s30 = sld [smem:[%s4105_s0 + %s3461_s28]]   ;;  %s3465_s28 = smov 29  }
  0x23   :  { %4127 = sst [smem:[#allocation64_spill]] %s3625_s12 }
  0x24   :  { %s3645_s12 = sld [smem:[%s4105_s0 + %s3463_s15]]   ;;  %s3467_s15 = smov 31  }
  0x25   :  { %4126 = sst [smem:[#allocation63_spill]] %s3620_s19 }
  0x26   :  { %s3640_s19 = sld [smem:[%s4105_s0 + %s3462_s7]]   ;;  %s3466_s7 = smov 30  }
  0x27   :  { %4128 = sst [smem:[#allocation65_spill]] %s3630_s21 }
  0x28   :  { %4129 = sst [smem:[#allocation66_spill]] %s3635_s30 }
  0x29   :  { %s3650_s21 = sld [smem:[%s4105_s0 + %s3464_s22]]   ;;  %s3468_s22 = smov 32  }
  0x2a   :  { %4131 = sst [smem:[#allocation68_spill]] %s3645_s12 }
  0x2b   :  { %s3655_s30 = sld [smem:[%s4105_s0 + %s3465_s28]]   ;;  %s3469_s28 = smov 33  }
  0x2c   :  { %4130 = sst [smem:[#allocation67_spill]] %s3640_s19 }
  0x2d   :  { %s3660_s19 = sld [smem:[%s4105_s0 + %s3466_s7]]  }
  0x2e   :  { %s3665_s12 = sld [smem:[%s4105_s0 + %s3467_s15]]  }
  0x2f   :  { %4132 = sst [smem:[#allocation69_spill]] %s3650_s21 }
  0x30   :  { %s3670_s21 = sld [smem:[%s4105_s0 + %s3468_s22]]  }
  0x31   :  { %4133 = sst [smem:[#allocation70_spill]] %s3655_s30 }
  0x32   :  { %s3675_s30 = sld [smem:[%s4105_s0 + %s3469_s28]]  }
  0x33   :  { %73 = vsyncpa [#allocation3], 0 }
  0x34   :  { %74 = vsyncpa [#allocation6], 0 }
  0x35   :  { %75 = vsyncpa [#allocation9], 0 }
  0x36   :  { %76 = vsyncpa [#allocation12], 0 }
  0x37   :  { %77 = vsyncpa [#allocation15], 0 }
  0x38   :  { %78 = vsyncpa [#allocation18], 0 }
  0x39   :  { %79 = vsyncpa [#allocation21], 0 }
  0x3a   :  { %80 = vsyncpa [#allocation24], 0 }
  0x3b   :  { %81 = vsyncpa [#allocation27], 0 }
  0x3c   :  { %82 = vsyncpa [#allocation30], 0 }
  0x3d   :  { %83 = vsyncpa [#allocation4], 0 }
  0x3e   :  { %84 = vsyncpa [#allocation34], 0 }
  0x3f   :  { %85 = vsyncpa [#allocation37], 0 }
  0x40   :  { %86 = vsyncpa [#allocation40], 0  ;;  %s3470_s7 = smov [#allocation5]   ;;  %s3471_s10 = smov [#allocation8]  }
  0x41   :  { %s103_s0 = sshll.u32 %s3470_s7, 4  ;;  %s125_s11 = sshll.u32 %s3471_s10, 4  ;;  %s104_s0 = int_to_ptr.vmem [resolvable:$true] %s103_s0  ;;  %s126_s11 = int_to_ptr.vmem [resolvable:$true] %s125_s11 }
  0x42   :  { %s2859_s15 = scalar_lea.hbm %s3515_s9, 128 }
  0x43   :  { %p2860_p0 = scmp.ne.s32.totalorder %s3515_s9, %s2859_s15  ;;  %p2863_p1 = scmp.lt.u32.totalorder %s2859_s15, %s3515_s9 }
  0x45   :  { %p2865_p2 = pnand %p2863_p1, %p2860_p0 }
  0x47   :  { %2868 = shalt.err (!%p2865_p2)
}
  0x48   :  { %s2869_s16 = scalar_lea.vmem %s104_s0, 128  ;;  %p2874_p4 = scmp.lt.s32.totalorder %s104_s0, %s104_s0 }
  0x49   :  { %p2870_p3 = scmp.ne.s32.totalorder %s104_s0, %s2869_s16  ;;  %p2875_p5 = scmp.lt.s32.totalorder %s2869_s16, %s2869_s16 }
  0x4b   :  { %p2876_p6 = por %p2875_p5, %p2874_p4 }
  0x4d   :  { %p2877_p7 = pnand %p2876_p6, %p2870_p3 }
  0x4f   :  { %2880 = shalt.err (!%p2877_p7)
}
  0x50   :  { %106 = dma.hbm_to_vmem [thread:$0]  %s3515_s9, 128, %s104_s0, [#allocation6]  }
  0x51   :  { %s2881_s18 = scalar_lea.hbm %s3525_s17, 16 }
  0x52   :  { %p2882_p8 = scmp.ne.s32.totalorder %s3525_s17, %s2881_s18  ;;  %p2885_p9 = scmp.lt.u32.totalorder %s2881_s18, %s3525_s17 }
  0x54   :  { %p2887_p10 = pnand %p2885_p9, %p2882_p8 }
  0x56   :  { %2890 = shalt.err (!%p2887_p10)
}
  0x57   :  { %s2891_s22 = scalar_lea.vmem %s126_s11, 16  ;;  %s2895_s23 = scalar_lea.vmem %s126_s11, 32 }
  0x58   :  { %p2892_p11 = scmp.ne.s32.totalorder %s126_s11, %s2891_s22  ;;  %p2896_p12 = scmp.lt.s32.totalorder %s126_s11, %s126_s11 }
  0x59   :  { %p2897_p13 = scmp.lt.s32.totalorder %s2895_s23, %s2891_s22 }
  0x5b   :  { %p2898_p0 = por %p2897_p13, %p2896_p12 }
  0x5d   :  { %p2899_p1 = pnand %p2898_p0, %p2892_p11 }
  0x5f   :  { %2902 = shalt.err (!%p2899_p1)
}
  0x60   :  { %128 = dma.hbm_to_vmem [thread:$0]  %s3525_s17, 16, %s126_s11, [#allocation9]  }
  0x61   :  { %s3472_s26 = smov [#allocation11]   ;;  %s3473_s28 = smov [#allocation14]  }
  0x62   :  { %s146_s9 = sshll.u32 %s3472_s26, 4  ;;  %s168_s1 = sshll.u32 %s3473_s28, 4  ;;  %s147_s9 = int_to_ptr.vmem [resolvable:$true] %s146_s9  ;;  %s3685_s1 = int_to_ptr.vmem [resolvable:$true] %s168_s1 }
  0x63   :  { %s2903_s2 = scalar_lea.hbm %s3540_s29, 384 }
  0x64   :  { %p2904_p2 = scmp.ne.s32.totalorder %s3540_s29, %s2903_s2  ;;  %p2907_p3 = scmp.lt.u32.totalorder %s2903_s2, %s3540_s29 }
  0x66   :  { %p2909_p4 = pnand %p2907_p3, %p2904_p2 }
  0x68   :  { %2912 = shalt.err (!%p2909_p4)
}
  0x69   :  { %s2913_s7 = scalar_lea.vmem %s147_s9, 384  ;;  %p2918_p6 = scmp.lt.s32.totalorder %s147_s9, %s147_s9 }
  0x6a   :  { %p2914_p5 = scmp.ne.s32.totalorder %s147_s9, %s2913_s7  ;;  %p2919_p7 = scmp.lt.s32.totalorder %s2913_s7, %s2913_s7 }
  0x6c   :  { %p2920_p8 = por %p2919_p7, %p2918_p6 }
  0x6e   :  { %p2921_p9 = pnand %p2920_p8, %p2914_p5 }
  0x70   :  { %2924 = shalt.err (!%p2921_p9)
}
  0x71   :  { %s3474_s17 = smov 128   ;;  %s3475_s0 = smov 8  }
  0x72   :  { %152 = dma.hbm_to_vmem [thread:$0]  %s3540_s29, 384, %s147_s9, [#allocation12], %s3474_s17, %s3474_s17, %s3475_s0  }
  0x73   :  { %s2925_s10 = scalar_lea.hbm %s3550_s8, 384 }
  0x74   :  { %p2926_p10 = scmp.ne.s32.totalorder %s3550_s8, %s2925_s10  ;;  %p2929_p11 = scmp.lt.u32.totalorder %s2925_s10, %s3550_s8 }
  0x76   :  { %p2931_p12 = pnand %p2929_p11, %p2926_p10 }
  0x78   :  { %2934 = shalt.err (!%p2931_p12)
}
  0x79   :  { %s2935_s11 = scalar_lea.vmem %s3685_s1, 384  ;;  %p2940_p0 = scmp.lt.s32.totalorder %s3685_s1, %s3685_s1 }
  0x7a   :  { %p2936_p13 = scmp.ne.s32.totalorder %s3685_s1, %s2935_s11  ;;  %p2941_p1 = scmp.lt.s32.totalorder %s2935_s11, %s2935_s11 }
  0x7c   :  { %p2942_p2 = por %p2941_p1, %p2940_p0 }
  0x7e   :  { %p2943_p3 = pnand %p2942_p2, %p2936_p13 }
  0x80   :  { %2946 = shalt.err (!%p2943_p3)
}
  0x81   :  { %174 = dma.hbm_to_vmem [thread:$0]  %s3550_s8, 384, %s3685_s1, [#allocation15], %s3474_s17, %s3474_s17, %s3475_s0  }
  0x82   :  { %s3476_s29 = smov [#allocation17]   ;;  %s3477_s16 = smov [#allocation20]  }
  0x83   :  { %s193_s15 = sshll.u32 %s3476_s29, 4  ;;  %s215_s18 = sshll.u32 %s3477_s16, 4  ;;  %s194_s15 = int_to_ptr.vmem [resolvable:$true] %s193_s15  ;;  %s216_s18 = int_to_ptr.vmem [resolvable:$true] %s215_s18 }
  0x84   :  { %s2947_s22 = scalar_lea.hbm %s3565_s24, 16 }
  0x85   :  { %p2948_p4 = scmp.ne.s32.totalorder %s3565_s24, %s2947_s22  ;;  %p2951_p5 = scmp.lt.u32.totalorder %s2947_s22, %s3565_s24 }
  0x87   :  { %p2953_p6 = pnand %p2951_p5, %p2948_p4 }
  0x89   :  { %2956 = shalt.err (!%p2953_p6)
}
  0x8a   :  { %s2957_s23 = scalar_lea.vmem %s194_s15, 16  ;;  %s2961_s26 = scalar_lea.vmem %s194_s15, 32 }
  0x8b   :  { %p2958_p7 = scmp.ne.s32.totalorder %s194_s15, %s2957_s23  ;;  %p2962_p8 = scmp.lt.s32.totalorder %s194_s15, %s194_s15 }
  0x8c   :  { %p2963_p9 = scmp.lt.s32.totalorder %s2961_s26, %s2957_s23 }
  0x8e   :  { %p2964_p10 = por %p2963_p9, %p2962_p8 }
  0x90   :  { %p2965_p11 = pnand %p2964_p10, %p2958_p7 }
  0x92   :  { %2968 = shalt.err (!%p2965_p11)
}
  0x93   :  { %196 = dma.hbm_to_vmem [thread:$0]  %s3565_s24, 16, %s194_s15, [#allocation18]  }
  0x94   :  { %s2969_s8 = scalar_lea.hbm %s3575_s6, 16 }
  0x95   :  { %p2970_p12 = scmp.ne.s32.totalorder %s3575_s6, %s2969_s8  ;;  %p2973_p13 = scmp.lt.u32.totalorder %s2969_s8, %s3575_s6 }
  0x97   :  { %p2975_p0 = pnand %p2973_p13, %p2970_p12 }
  0x99   :  { %2978 = shalt.err (!%p2975_p0)
}
  0x9a   :  { %s2979_s9 = scalar_lea.vmem %s216_s18, 16  ;;  %s2983_s28 = scalar_lea.vmem %s216_s18, 32 }
  0x9b   :  { %p2980_p1 = scmp.ne.s32.totalorder %s216_s18, %s2979_s9  ;;  %p2984_p2 = scmp.lt.s32.totalorder %s216_s18, %s216_s18 }
  0x9c   :  { %p2985_p3 = scmp.lt.s32.totalorder %s2983_s28, %s2979_s9 }
  0x9e   :  { %p2986_p4 = por %p2985_p3, %p2984_p2 }
  0xa0   :  { %p2987_p5 = pnand %p2986_p4, %p2980_p1 }
  0xa2   :  { %2990 = shalt.err (!%p2987_p5)
}
  0xa3   :  { %218 = dma.hbm_to_vmem [thread:$0]  %s3575_s6, 16, %s216_s18, [#allocation21]  }
  0xa4   :  { %s3478_s1 = smov [#allocation23]   ;;  %s3479_s2 = smov [#allocation26]  }
  0xa5   :  { %s238_s24 = sshll.u32 %s3478_s1, 4  ;;  %s263_s7 = sshll.u32 %s3479_s2, 4  ;;  %s239_s24 = int_to_ptr.vmem [resolvable:$true] %s238_s24  ;;  %s264_s7 = int_to_ptr.vmem [resolvable:$true] %s263_s7 }
  0xa6   :  { %s2991_s10 = scalar_lea.hbm %s3590_s27, 1536 }
  0xa7   :  { %p2992_p6 = scmp.ne.s32.totalorder %s3590_s27, %s2991_s10  ;;  %p2995_p7 = scmp.lt.u32.totalorder %s2991_s10, %s3590_s27 }
  0xa9   :  { %p2997_p8 = pnand %p2995_p7, %p2992_p6 }
  0xab   :  { %3000 = shalt.err (!%p2997_p8)
}
  0xac   :  { %s3001_s11 = scalar_lea.vmem %s239_s24, 1536  ;;  %p3006_p10 = scmp.lt.s32.totalorder %s239_s24, %s239_s24 }
  0xad   :  { %p3002_p9 = scmp.ne.s32.totalorder %s239_s24, %s3001_s11  ;;  %p3007_p11 = scmp.lt.s32.totalorder %s3001_s11, %s3001_s11 }
  0xaf   :  { %p3008_p12 = por %p3007_p11, %p3006_p10 }
  0xb1   :  { %p3009_p13 = pnand %p3008_p12, %p3002_p9 }
  0xb3   :  { %3012 = shalt.err (!%p3009_p13)
}
  0xb4   :  { %s3480_s29 = smov 384   ;;  %s3481_s6 = smov 24  }
  0xb5   :  { %244 = dma.hbm_to_vmem [thread:$0]  %s3590_s27, 1536, %s239_s24, [#allocation24], %s3480_s29, %s3480_s29, %s3481_s6  }
  0xb6   :  { %s3013_s15 = scalar_lea.hbm %s3605_s20, 128 }
  0xb7   :  { %p3014_p0 = scmp.ne.s32.totalorder %s3605_s20, %s3013_s15  ;;  %p3017_p1 = scmp.lt.u32.totalorder %s3013_s15, %s3605_s20 }
  0xb9   :  { %p3019_p2 = pnand %p3017_p1, %p3014_p0 }
  0xbb   :  { %3022 = shalt.err (!%p3019_p2)
}
  0xbc   :  { %s3023_s16 = scalar_lea.vmem %s264_s7, 128  ;;  %p3028_p4 = scmp.lt.s32.totalorder %s264_s7, %s264_s7 }
  0xbd   :  { %p3024_p3 = scmp.ne.s32.totalorder %s264_s7, %s3023_s16  ;;  %p3029_p5 = scmp.lt.s32.totalorder %s3023_s16, %s3023_s16 }
  0xbf   :  { %p3030_p6 = por %p3029_p5, %p3028_p4 }
  0xc1   :  { %p3031_p7 = pnand %p3030_p6, %p3024_p3 }
  0xc3   :  { %3034 = shalt.err (!%p3031_p7)
}
  0xc4   :  { %266 = dma.hbm_to_vmem [thread:$0]  %s3605_s20, 128, %s264_s7, [#allocation27]  }
  0xc5   :  { %s3482_s18 = smov [#allocation29]   ;;  %s3483_s27 = smov [#allocation2]  }
  0xc6   :  { %s285_s22 = sshll.u32 %s3482_s18, 4  ;;  %s93_s23 = sshll.u32 %s3483_s27, 4  ;;  %s286_s22 = int_to_ptr.vmem [resolvable:$true] %s285_s22  ;;  %s94_s23 = int_to_ptr.vmem [resolvable:$true] %s93_s23 }
  0xc7   :  { %s3035_s26 = scalar_lea.hbm %s3615_s4, 16 }
  0xc8   :  { %p3036_p8 = scmp.ne.s32.totalorder %s3615_s4, %s3035_s26  ;;  %p3039_p9 = scmp.lt.u32.totalorder %s3035_s26, %s3615_s4 }
  0xca   :  { %p3041_p10 = pnand %p3039_p9, %p3036_p8 }
  0xcc   :  { %3044 = shalt.err (!%p3041_p10)
}
  0xcd   :  { %s3045_s8 = scalar_lea.vmem %s286_s22, 16  ;;  %s3049_s9 = scalar_lea.vmem %s286_s22, 32 }
  0xce   :  { %p3046_p11 = scmp.ne.s32.totalorder %s286_s22, %s3045_s8  ;;  %p3050_p12 = scmp.lt.s32.totalorder %s286_s22, %s286_s22 }
  0xcf   :  { %p3051_p13 = scmp.lt.s32.totalorder %s3049_s9, %s3045_s8 }
  0xd1   :  { %p3052_p0 = por %p3051_p13, %p3050_p12 }
  0xd3   :  { %p3053_p1 = pnand %p3052_p0, %p3046_p11 }
  0xd5   :  { %3056 = shalt.err (!%p3053_p1)
}
  0xd6   :  { %288 = dma.hbm_to_vmem [thread:$0]  %s3615_s4, 16, %s286_s22, [#allocation30]  }
  0xd7   :  { %s3057_s20 = scalar_lea.hbm %s3510_s5, 128 }
  0xd8   :  { %p3058_p2 = scmp.ne.s32.totalorder %s3510_s5, %s3057_s20  ;;  %p3061_p3 = scmp.lt.u32.totalorder %s3057_s20, %s3510_s5 }
  0xda   :  { %p3063_p4 = pnand %p3061_p3, %p3058_p2 }
  0xdc   :  { %3066 = shalt.err (!%p3063_p4)
}
  0xdd   :  { %s3067_s28 = scalar_lea.vmem %s94_s23, 128  ;;  %p3072_p6 = scmp.lt.s32.totalorder %s94_s23, %s94_s23 }
  0xde   :  { %p3068_p5 = scmp.ne.s32.totalorder %s94_s23, %s3067_s28  ;;  %p3073_p7 = scmp.lt.s32.totalorder %s3067_s28, %s3067_s28 }
  0xe0   :  { %p3074_p8 = por %p3073_p7, %p3072_p6 }
  0xe2   :  { %p3075_p9 = pnand %p3074_p8, %p3068_p5 }
  0xe4   :  { %3078 = shalt.err (!%p3075_p9)
}
  0xe5   :  { %96 = dma.hbm_to_vmem [thread:$0]  %s3510_s5, 128, %s94_s23, [#allocation3]  }
  0xe6   :  { %s3484_s1 = smov [#allocation7]   ;;  %s3485_s4 = smov [#allocation10]  }
  0xe7   :  { %s112_s24 = sshll.u32 %s3484_s1, 4  ;;  %s137_s2 = sshll.u32 %s3485_s4, 4  ;;  %s113_s24 = int_to_ptr.vmem [resolvable:$true] %s112_s24  ;;  %s138_s2 = int_to_ptr.vmem [resolvable:$true] %s137_s2 }
  0xe8   :  { %s3079_s7 = scalar_lea.hbm %s3520_s13, 256 }
  0xe9   :  { %p3080_p10 = scmp.ne.s32.totalorder %s3520_s13, %s3079_s7  ;;  %p3083_p11 = scmp.lt.u32.totalorder %s3079_s7, %s3520_s13 }
  0xeb   :  { %p3085_p12 = pnand %p3083_p11, %p3080_p10 }
  0xed   :  { %3088 = shalt.err (!%p3085_p12)
}
  0xee   :  { %s3089_s10 = scalar_lea.vmem %s113_s24, 256  ;;  %p3094_p0 = scmp.lt.s32.totalorder %s113_s24, %s113_s24 }
  0xef   :  { %p3090_p13 = scmp.ne.s32.totalorder %s113_s24, %s3089_s10  ;;  %p3095_p1 = scmp.lt.s32.totalorder %s3089_s10, %s3089_s10 }
  0xf1   :  { %p3096_p2 = por %p3095_p1, %p3094_p0 }
  0xf3   :  { %p3097_p3 = pnand %p3096_p2, %p3090_p13 }
  0xf5   :  { %3100 = shalt.err (!%p3097_p3)
}
  0xf6   :  { %118 = dma.hbm_to_vmem [thread:$0]  %s3520_s13, 256, %s113_s24, [#allocation6], %s3474_s17, %s3474_s17, %s3475_s0  }
  0xf7   :  { %s3101_s5 = scalar_lea.hbm %s3535_s25, 16 }
  0xf8   :  { %p3102_p4 = scmp.ne.s32.totalorder %s3535_s25, %s3101_s5  ;;  %p3105_p5 = scmp.lt.u32.totalorder %s3101_s5, %s3535_s25 }
  0xfa   :  { %p3107_p6 = pnand %p3105_p5, %p3102_p4 }
  0xfc   :  { %3110 = shalt.err (!%p3107_p6)
}
  0xfd   :  { %s3111_s11 = scalar_lea.vmem %s138_s2, 16  ;;  %s3115_s15 = scalar_lea.vmem %s138_s2, 32 }
  0xfe   :  { %p3112_p7 = scmp.ne.s32.totalorder %s138_s2, %s3111_s11  ;;  %p3116_p8 = scmp.lt.s32.totalorder %s138_s2, %s138_s2 }
  0xff   :  { %p3117_p9 = scmp.lt.s32.totalorder %s3115_s15, %s3111_s11 }
 0x101   :  { %p3118_p10 = por %p3117_p9, %p3116_p8 }
 0x103   :  { %p3119_p11 = pnand %p3118_p10, %p3112_p7 }
 0x105   :  { %3122 = shalt.err (!%p3119_p11)
}
 0x106   :  { %140 = dma.hbm_to_vmem [thread:$0]  %s3535_s25, 16, %s138_s2, [#allocation9]  }
 0x107   :  { %s3486_s16 = smov [#allocation13]   ;;  %s3487_s18 = smov [#allocation16]  }
 0x108   :  { %s159_s13 = sshll.u32 %s3486_s16, 4  ;;  %s181_s22 = sshll.u32 %s3487_s18, 4  ;;  %s160_s13 = int_to_ptr.vmem [resolvable:$true] %s159_s13  ;;  %s182_s22 = int_to_ptr.vmem [resolvable:$true] %s181_s22 }
 0x109   :  { %s3123_s27 = scalar_lea.hbm %s3545_s3, 16 }
 0x10a   :  { %p3124_p12 = scmp.ne.s32.totalorder %s3545_s3, %s3123_s27  ;;  %p3127_p13 = scmp.lt.u32.totalorder %s3123_s27, %s3545_s3 }
 0x10c   :  { %p3129_p0 = pnand %p3127_p13, %p3124_p12 }
 0x10e   :  { %3132 = shalt.err (!%p3129_p0)
}
 0x10f   :  { %s3133_s23 = scalar_lea.vmem %s160_s13, 16  ;;  %s3137_s26 = scalar_lea.vmem %s160_s13, 32 }
 0x110   :  { %p3134_p1 = scmp.ne.s32.totalorder %s160_s13, %s3133_s23  ;;  %p3138_p2 = scmp.lt.s32.totalorder %s160_s13, %s160_s13 }
 0x111   :  { %p3139_p3 = scmp.lt.s32.totalorder %s3137_s26, %s3133_s23 }
 0x113   :  { %p3140_p4 = por %p3139_p3, %p3138_p2 }
 0x115   :  { %p3141_p5 = pnand %p3140_p4, %p3134_p1 }
 0x117   :  { %3144 = shalt.err (!%p3141_p5)
}
 0x118   :  { %162 = dma.hbm_to_vmem [thread:$0]  %s3545_s3, 16, %s160_s13, [#allocation12]  }
 0x119   :  { %s3145_s25 = scalar_lea.hbm %s3555_s14, 16 }
 0x11a   :  { %p3146_p6 = scmp.ne.s32.totalorder %s3555_s14, %s3145_s25  ;;  %p3149_p7 = scmp.lt.u32.totalorder %s3145_s25, %s3555_s14 }
 0x11c   :  { %p3151_p8 = pnand %p3149_p7, %p3146_p6 }
 0x11e   :  { %3154 = shalt.err (!%p3151_p8)
}
 0x11f   :  { %s3155_s8 = scalar_lea.vmem %s182_s22, 16  ;;  %s3159_s9 = scalar_lea.vmem %s182_s22, 32 }
 0x120   :  { %p3156_p9 = scmp.ne.s32.totalorder %s182_s22, %s3155_s8  ;;  %p3160_p10 = scmp.lt.s32.totalorder %s182_s22, %s182_s22 }
 0x121   :  { %p3161_p11 = scmp.lt.s32.totalorder %s3159_s9, %s3155_s8 }
 0x123   :  { %p3162_p12 = por %p3161_p11, %p3160_p10 }
 0x125   :  { %p3163_p13 = pnand %p3162_p12, %p3156_p9 }
 0x127   :  { %3166 = shalt.err (!%p3163_p13)
}
 0x128   :  { %s4134_s20 = sld [smem:[#allocation57_spill]]  ;;  %s3488_s28 = smov [#allocation19]  }
 0x129   :  { %184 = dma.hbm_to_vmem [thread:$0]  %s3555_s14, 16, %s182_s22, [#allocation15]  }
 0x12a   :  { %s202_s3 = sshll.u32 %s3488_s28, 4  ;;  %s3489_s1 = smov [#allocation22]   ;;  %s203_s3 = int_to_ptr.vmem [resolvable:$true] %s202_s3 }
 0x12b   :  { %s224_s24 = sshll.u32 %s3489_s1, 4  ;;  %s3752_s24 = int_to_ptr.vmem [resolvable:$true] %s224_s24 }
 0x12e   :  { %s3167_s4 = scalar_lea.hbm %s4134_s20, 384 }
 0x12f   :  { %p3168_p0 = scmp.ne.s32.totalorder %s4134_s20, %s3167_s4  ;;  %p3171_p1 = scmp.lt.u32.totalorder %s3167_s4, %s4134_s20 }
 0x131   :  { %p3173_p2 = pnand %p3171_p1, %p3168_p0 }
 0x133   :  { %3176 = shalt.err (!%p3173_p2)
}
 0x134   :  { %s3177_s2 = scalar_lea.vmem %s203_s3, 384  ;;  %p3182_p4 = scmp.lt.s32.totalorder %s203_s3, %s203_s3 }
 0x135   :  { %p3178_p3 = scmp.ne.s32.totalorder %s203_s3, %s3177_s2  ;;  %p3183_p5 = scmp.lt.s32.totalorder %s3177_s2, %s3177_s2 }
 0x137   :  { %p3184_p6 = por %p3183_p5, %p3182_p4 }
 0x139   :  { %p3185_p7 = pnand %p3184_p6, %p3178_p3 }
 0x13b   :  { %3188 = shalt.err (!%p3185_p7)
}
 0x13c   :  { %s4135_s14 = sld [smem:[#allocation58_spill]] }
 0x13d   :  { %208 = dma.hbm_to_vmem [thread:$0]  %s4134_s20, 384, %s203_s3, [#allocation18], %s3474_s17, %s3474_s17, %s3475_s0  }
 0x142   :  { %s3189_s7 = scalar_lea.hbm %s4135_s14, 1536 }
 0x143   :  { %p3190_p8 = scmp.ne.s32.totalorder %s4135_s14, %s3189_s7  ;;  %p3193_p9 = scmp.lt.u32.totalorder %s3189_s7, %s4135_s14 }
 0x145   :  { %p3195_p10 = pnand %p3193_p9, %p3190_p8 }
 0x147   :  { %3198 = shalt.err (!%p3195_p10)
}
 0x148   :  { %s3199_s10 = scalar_lea.vmem %s3752_s24, 1536  ;;  %p3204_p12 = scmp.lt.s32.totalorder %s3752_s24, %s3752_s24 }
 0x149   :  { %p3200_p11 = scmp.ne.s32.totalorder %s3752_s24, %s3199_s10  ;;  %p3205_p13 = scmp.lt.s32.totalorder %s3199_s10, %s3199_s10 }
 0x14b   :  { %p3206_p0 = por %p3205_p13, %p3204_p12 }
 0x14d   :  { %p3207_p1 = pnand %p3206_p0, %p3200_p11 }
 0x14f   :  { %3210 = shalt.err (!%p3207_p1)
}
 0x150   :  { %s4136_s5 = sld [smem:[#allocation60_spill]]  ;;  %s3490_s11 = smov [#allocation25]  }
 0x151   :  { %230 = dma.hbm_to_vmem [thread:$0]  %s4135_s14, 1536, %s3752_s24, [#allocation21], %s3480_s29, %s3480_s29, %s3481_s6  }
 0x152   :  { %s251_s15 = sshll.u32 %s3490_s11, 4  ;;  %s3491_s16 = smov [#allocation28]   ;;  %s252_s15 = int_to_ptr.vmem [resolvable:$true] %s251_s15 }
 0x153   :  { %s272_s13 = sshll.u32 %s3491_s16, 4  ;;  %s3773_s13 = int_to_ptr.vmem [resolvable:$true] %s272_s13 }
 0x156   :  { %s3211_s18 = scalar_lea.hbm %s4136_s5, 48 }
 0x157   :  { %p3212_p2 = scmp.ne.s32.totalorder %s4136_s5, %s3211_s18  ;;  %p3215_p3 = scmp.lt.u32.totalorder %s3211_s18, %s4136_s5 }
 0x159   :  { %p3217_p4 = pnand %p3215_p3, %p3212_p2 }
 0x15b   :  { %3220 = shalt.err (!%p3217_p4)
}
 0x15c   :  { %s3221_s22 = scalar_lea.vmem %s252_s15, 48  ;;  %s3225_s27 = scalar_lea.vmem %s252_s15, 64 }
 0x15d   :  { %p3222_p5 = scmp.ne.s32.totalorder %s252_s15, %s3221_s22  ;;  %p3226_p6 = scmp.lt.s32.totalorder %s252_s15, %s252_s15 }
 0x15e   :  { %p3227_p7 = scmp.lt.s32.totalorder %s3225_s27, %s3221_s22 }
 0x160   :  { %p3228_p8 = por %p3227_p7, %p3226_p6 }
 0x162   :  { %p3229_p9 = pnand %p3228_p8, %p3222_p5 }
 0x164   :  { %3232 = shalt.err (!%p3229_p9)
}
 0x165   :  { %s4137_s29 = sld [smem:[#allocation62_spill]] }
 0x166   :  { %254 = dma.hbm_to_vmem [thread:$0]  %s4136_s5, 48, %s252_s15, [#allocation24]  }
 0x16b   :  { %s3233_s6 = scalar_lea.hbm %s4137_s29, 384 }
 0x16c   :  { %p3234_p10 = scmp.ne.s32.totalorder %s4137_s29, %s3233_s6  ;;  %p3237_p11 = scmp.lt.u32.totalorder %s3233_s6, %s4137_s29 }
 0x16e   :  { %p3239_p12 = pnand %p3237_p11, %p3234_p10 }
 0x170   :  { %3242 = shalt.err (!%p3239_p12)
}
 0x171   :  { %s3243_s23 = scalar_lea.vmem %s3773_s13, 384  ;;  %p3248_p0 = scmp.lt.s32.totalorder %s3773_s13, %s3773_s13 }
 0x172   :  { %p3244_p13 = scmp.ne.s32.totalorder %s3773_s13, %s3243_s23  ;;  %p3249_p1 = scmp.lt.s32.totalorder %s3243_s23, %s3243_s23 }
 0x174   :  { %p3250_p2 = por %p3249_p1, %p3248_p0 }
 0x176   :  { %p3251_p3 = pnand %p3250_p2, %p3244_p13 }
 0x178   :  { %3254 = shalt.err (!%p3251_p3)
}
 0x179   :  { %s4138_s26 = sld [smem:[#allocation65_spill]]  ;;  %s3492_s25 = smov [#allocation31]  }
 0x17a   :  { %278 = dma.hbm_to_vmem [thread:$0]  %s4137_s29, 384, %s3773_s13, [#allocation27], %s3474_s17, %s3474_s17, %s3475_s0  }
 0x17b   :  { %s298_s8 = sshll.u32 %s3492_s25, 4  ;;  %s299_s8 = int_to_ptr.vmem [resolvable:$true] %s298_s8 }
 0x17f   :  { %s3255_s9 = scalar_lea.hbm %s4138_s26, 384 }
 0x180   :  { %p3256_p4 = scmp.ne.s32.totalorder %s4138_s26, %s3255_s9  ;;  %p3259_p5 = scmp.lt.u32.totalorder %s3255_s9, %s4138_s26 }
 0x182   :  { %p3261_p6 = pnand %p3259_p5, %p3256_p4 }
 0x184   :  { %3264 = shalt.err (!%p3261_p6)
}
 0x185   :  { %s3265_s20 = scalar_lea.vmem %s299_s8, 384  ;;  %p3270_p8 = scmp.lt.s32.totalorder %s299_s8, %s299_s8 }
 0x186   :  { %p3266_p7 = scmp.ne.s32.totalorder %s299_s8, %s3265_s20  ;;  %p3271_p9 = scmp.lt.s32.totalorder %s3265_s20, %s3265_s20 }
 0x188   :  { %p3272_p10 = por %p3271_p9, %p3270_p8 }
 0x18a   :  { %p3273_p11 = pnand %p3272_p10, %p3266_p7 }
 0x18c   :  { %3276 = shalt.err (!%p3273_p11)
}
 0x18d   :  { %304 = dma.hbm_to_vmem [thread:$0]  %s4138_s26, 384, %s299_s8, [#allocation30], %s3474_s17, %s3474_s17, %s3475_s0  }
 0x18e   :  { %3409 = dma.done.wait [#allocation3], 128  }
 0x18f   :  { %3410 = vsyncadd [#allocation3], 4294967168 }
 0x190   :  { %3411 = dma.done.wait [#allocation6], 384  }
 0x191   :  { %3412 = vsyncadd [#allocation6], 4294966912 }
 0x192   :  { %3413 = dma.done.wait [#allocation9], 32  }
 0x193   :  { %3414 = vsyncadd [#allocation9], 4294967264 }
 0x194   :  { %3415 = dma.done.wait [#allocation12], 400  }
 0x195   :  { %3416 = vsyncadd [#allocation12], 4294966896 }
 0x196   :  { %3417 = dma.done.wait [#allocation15], 400  }
 0x197   :  { %3418 = vsyncadd [#allocation15], 4294966896 }
 0x198   :  { %3419 = dma.done.wait [#allocation18], 400  }
 0x199   :  { %3420 = vsyncadd [#allocation18], 4294966896 }
 0x19a   :  { %3421 = dma.done.wait [#allocation21], 1552  }
 0x19b   :  { %3422 = vsyncadd [#allocation21], 4294965744 }
 0x19c   :  { %3423 = dma.done.wait [#allocation24], 1584  }
 0x19d   :  { %3424 = vsyncadd [#allocation24], 4294965712 }
 0x19e   :  { %3425 = dma.done.wait [#allocation27], 512  }
 0x19f   :  { %3426 = vsyncadd [#allocation27], 4294966784 }
 0x1a0   :  { %3427 = dma.done.wait [#allocation30], 400  }
 0x1a1   :  { %3428 = vsyncadd [#allocation30], 4294966896  ;;  %s4139_s17 = sld [smem:[#allocation55_spill]]  ;;  %v3493_v0 = vmov 0.0|0.0   ;;  %vm3494_vm0 = vmmov 0   ;;  %v3495_v1 = vmov 0.0  }
 0x1a2   :  { %2680 = vmatprep.subr.bf16.mxu0 %v3493_v0  ;;  %2566 = vmatprep.mubr.msk.f32.mxu0 %vm3494_vm0, %v3495_v1  ;;  %v369_v2 = vld [vmem:[#allocation7] sm:$0xff]  ;;  %v370_v3 = vld [vmem:[#allocation7 + $0x8] sm:$0xff]  ;;  %v368_v8 = vld [vmem:[#allocation2] sm:$0xff]  ;;  %vm378_vm1 = vcmask 130048   ;;  %vm464_vm2 = vcmask 261120   ;;  %vm549_vm3 = vcmask 195584  }
 0x1a3   :  { %2683 = vmatprep.subr.bf16.mxu1 %v3493_v0  ;;  %2577 = vmatprep.mubr.msk.f32.mxu1 %vm3494_vm0, %v3495_v1  ;;  %v2681_v4 = vpack.c.bf16 %v370_v3, %v369_v2  ;;  %v2476_v12 = vld [vmem:[#allocation8] ss:$0 sm:$0xff]  ;;  %v539_v17 = vld [vmem:[#allocation11] sm:$0xff]  ;;  %v540_v18 = vld [vmem:[#allocation11 + $0x8] sm:$0xff]  ;;  %s4140_s0 = sld [smem:[#allocation61_spill]]  ;;  %s4141_s28 = sld [smem:[#allocation59_spill]] }
 0x1a4   :  { %v2690_v19 = vpack.c.bf16 %v540_v18, %v539_v17  ;;  %v541_v20 = vld [vmem:[#allocation11 + $0x10] sm:$0xff]  ;;  %v625_v21 = vld [vmem:[#allocation22 + $0x8] sm:$0xff]  ;;  %v627_v25 = vld [vmem:[#allocation22 + $0x18] sm:$0xff]  ;;  %s4142_s3 = sld [smem:[#allocation63_spill]]  ;;  %vm1373_vm4 = vcmask 1043456   ;;  %vm1369_vm5 = vcmask 162816  }
 0x1a5   :  { %2682 = vmatpush3.bf16.msra.mxu0 %v2681_v4  ;;  %v628_v22 = vld [vmem:[#allocation22 + $0x20] sm:$0xff]  ;;  %v2478_v27 = vld [vmem:[#allocation10] ss:$0 sm:$0xff]  ;;  %v626_v28 = vld [vmem:[#allocation22 + $0x10] sm:$0xff]  ;;  %s4143_s1 = sld [smem:[#allocation56_spill]]  ;;  %s4145_s4 = sld [smem:[#allocation67_spill]] }
 0x1a6   :  { %2689 = vmatprep.subr.bf16.mxu0 %v3493_v0  ;;  %v624_v23 = vld [vmem:[#allocation22] sm:$0xff]  ;;  %v2692_v24 = vpack.c.bf16 %v628_v22, %v625_v21  ;;  %v629_v29 = vld [vmem:[#allocation22 + $0x28] sm:$0xff]  ;;  %v631_v35 = vld [vmem:[#allocation22 + $0x38] sm:$0xff]  ;;  %s4144_s24 = sld [smem:[#allocation64_spill]]  ;;  %s4146_s2 = sld [smem:[#allocation66_spill]] }
 0x1a7   :  { %v453_v5 = vld [vmem:[%s4139_s17] sm:$0xff]  ;;  %v454_v6 = vld [vmem:[%s4139_s17 + $0x8] sm:$0xff]  ;;  %v455_v9 = vld [vmem:[%s4139_s17 + $0x10] sm:$0xff]  ;;  %v2694_v26 = vpack.c.bf16 %v627_v25, %v624_v23  ;;  %v2701_v33 = vpack.c.bf16 %v629_v29, %v626_v28  ;;  %s3496_s14 = smov [#allocation33]  }
 0x1a8   :  { %v2684_v7 = vpack.c.bf16 %v454_v6, %v453_v5  ;;  %2567 = vmatmul.mubr.msk.f32.vlgmr.msra.gmra.mrb[0].mxu0 %vm378_vm1, %v368_v8  ;;  %v456_v10 = vld [vmem:[%s4139_s17 + $0x18] sm:$0xff]  ;;  %v634_v36 = vld [vmem:[#allocation22 + $0x50] sm:$0xff]  ;;  %v635_v42 = vld [vmem:[#allocation22 + $0x58] sm:$0xff]  ;;  %v638_v5 = vlaneseq  ;;  %s2367_s7 = sshll.u32 %s3496_s14, 4  ;;  %s2368_s7 = int_to_ptr.vmem [resolvable:$true] %s2367_s7 }
 0x1a9   :  { %2586 = vmatprep.mubr.msk.f32.mxu0 %vm3494_vm0, %v3495_v1  ;;  %v2687_v11 = vpack.c.bf16 %v456_v10, %v455_v9  ;;  %2691 = vmatpush3.bf16.msra.mxu0 %v2690_v19  ;;  %v2696_v37 = vpack.c.bf16 %v634_v36, %v631_v35  ;;  %v630_v38 = vld [vmem:[#allocation22 + $0x30] sm:$0xff]  ;;  %v633_v39 = vld [vmem:[#allocation22 + $0x48] sm:$0xff]  ;;  %v632_v40 = vld [vmem:[#allocation22 + $0x40] sm:$0xff]  ;;  %s3277_s10 = scalar_lea.vmem %s2368_s7, 128  ;;  %p3282_p13 = scmp.lt.s32.totalorder %s2368_s7, %s2368_s7 }
 0x1aa   :  { %2685 = vmatpush3.bf16.msra.mxu1 %v2684_v7  ;;  %2584 = vmatprep.subr.mxu0 %v3495_v1  ;;  %v2698_v41 = vpack.c.bf16 %v633_v39, %v630_v38  ;;  %v2704_v43 = vpack.c.bf16 %v635_v42, %v632_v40  ;;  %v809_v44 = vld [vmem:[%s4140_s0 + $0x8] sm:$0xff]  ;;  %v2480_v47 = vld [vmem:[#allocation13] ss:$0 sm:$0xff]  ;;  %v808_v52 = vld [vmem:[%s4140_s0] sm:$0xff]  ;;  %v3855_v6 = vshrl.u32 %v638_v5, 7  ;;  %p3278_p12 = scmp.ne.s32.totalorder %s2368_s7, %s3277_s10  ;;  %p3283_p0 = scmp.lt.s32.totalorder %s3277_s10, %s3277_s10 }
 0x1ab   :  { %2686 = vmatprep.subr.bf16.mxu1 %v3493_v0  ;;  %v817_v45 = vld [vmem:[%s4140_s0 + $0x48] sm:$0xff]  ;;  %v816_v53 = vld [vmem:[%s4140_s0 + $0x40] sm:$0xff]  ;;  %v811_v54 = vld [vmem:[%s4140_s0 + $0x18] sm:$0xff] }
 0x1ac   :  { %v3823_v46 = vpack.c.bf16 %v817_v45, %v809_v44  ;;  %v3833_v55 = vpack.c.bf16 %v816_v53, %v808_v52  ;;  %v819_v56 = vld [vmem:[%s4140_s0 + $0x58] sm:$0xff]  ;;  %v810_v57 = vld [vmem:[%s4140_s0 + $0x10] sm:$0xff]  ;;  %v813_v61 = vld [vmem:[%s4140_s0 + $0x28] sm:$0xff]  ;;  %v3858_v7 = vsub.s32 1, %v3855_v6  ;;  %v840_v42 = vsub.s32 3, %v3855_v6  ;;  %p3284_p1 = por %p3283_p0, %p3282_p13 }
 0x1ad   :  { %2585 = vmatpush3.msra.mxu0 %v541_v20  ;;  %v818_v58 = vld [vmem:[%s4140_s0 + $0x50] sm:$0xff]  ;;  %v3838_v59 = vpack.c.bf16 %v819_v56, %v811_v54  ;;  %v821_v62 = vld [vmem:[%s4140_s0 + $0x68] sm:$0xff]  ;;  %v815_v2 = vld [vmem:[%s4140_s0 + $0x38] sm:$0xff] }
 0x1ae   :  { %2688 = vmatpush3.bf16.msra.mxu1 %v2687_v11  ;;  %2700 = vmatprep.subr.bf16.mxu0 %v3493_v0  ;;  %v3840_v60 = vpack.c.bf16 %v818_v58, %v810_v57  ;;  %v3846_v63 = vpack.c.bf16 %v821_v62, %v813_v61  ;;  %v823_v3 = vld [vmem:[%s4140_s0 + $0x78] sm:$0xff]  ;;  %v3861_v8 = vld [vmem:[%s4141_s28] sm:$0x7]  ;;  %v1189_v23 = vld [vmem:[#allocation28 + $0x8] sm:$0xff]  ;;  %v852_v61 = vsub.s32 6, %v3855_v6  ;;  %p3285_p2 = pnand %p3284_p1, %p3278_p12 }
 0x1af   :  { %2693 = vmatprep.subr.bf16.mxu1 %v2692_v24  ;;  %v3852_v4 = vpack.c.bf16 %v823_v3, %v815_v2  ;;  %v812_v9 = vld [vmem:[%s4140_s0 + $0x20] sm:$0xff]  ;;  %v645_v10 = vrot.slane %v3861_v8, %v3858_v7  ;;  %v1190_v29 = vld [vmem:[#allocation28 + $0x10] sm:$0xff]  ;;  %v1273_v35 = vld [vmem:[%s4142_s3 + $0x8] sm:$0xff] }
 0x1b0   :  { %v820_v11 = vld [vmem:[%s4140_s0 + $0x60] sm:$0xff]  ;;  %v1275_v38 = vld [vmem:[%s4142_s3 + $0x18] sm:$0xff] }
 0x1b1   :  { %v3874_v19 = vpack.c.bf16 %v820_v11, %v812_v9  ;;  %v1188_v22 = vld [vmem:[#allocation28] sm:$0xff]  ;;  %v824_v40 = vld [vmem:[#allocation26] sm:$0xff]  ;;  %v856_v11 = vsub.s32 7, %v3855_v6 }
 0x1b2   :  { %v2723_v25 = vpack.c.bf16 %v1189_v23, %v1188_v22  ;;  %v1360_v28 = vld [vmem:[#allocation14 + $0x8] sm:$0xff]  ;;  %v3920_v45 = vrot.slane %v824_v40, %v3858_v7 }
 0x27b   :  { %v448_v13 = vpop.f32.mrb[0].mxu0 }
 0x27c   :  { %v449_v14 = vadd.f32 %v2476_v12, %v448_v13  ;;  %v2568_v15 = vpop.f32.mrb[1].mxu0  ;;  %v814_v12 = vld [vmem:[%s4140_s0 + $0x30] sm:$0xff] }
 0x27d   :  { %v822_v13 = vld [vmem:[%s4140_s0 + $0x70] sm:$0xff]  ;;  %v3872_v15 = vsub.s32 2, %v3855_v6 }
 0x27e   :  { %v452_v16 = vmax.f32 %v449_v14, 0.0  ;;  %v3876_v20 = vpack.c.bf16 %v822_v13, %v814_v12 }
 0x27f   :  { %v649_v24 = vrot.slane %v3861_v8, %v3872_v15  ;;  %v3917_v44 = vrot.slane %v824_v40, %v3872_v15 }
 0x280   :  { %2578 = vmatmul.mubr.msk.f32.vlgmr.msra.gmra.mrb[0].mxu1 %vm464_vm2, %v452_v16 }
 0x281   :  { %720 = vmatprep.mubr.f32.mxu1 %v3495_v1  ;;  %2695 = vmatpush1.bf16.msra.mxu1 %v2694_v26 }
 0x282   :  { %2697 = vmatprep.subr.bf16.mxu1 %v2696_v37  ;;  %v1274_v37 = vld [vmem:[%s4142_s3 + $0x10] sm:$0xff] }
 0x283   :  { %v2729_v39 = vpack.c.bf16 %v1275_v38, %v1274_v37 }
 0x285   :  { %2699 = vmatpush1.bf16.msra.mxu1 %v2698_v41  ;;  %v3910_v41 = vsub.s32 0, %v3855_v6 }
 0x286   :  { %2707 = vmatprep.subr.bf16.mxu1 %v3823_v46 }
 0x353   :  { %v534_v30 = vpop.f32.mrb[0].mxu1 }
 0x354   :  { %v535_v31 = vadd.f32 %v2478_v27, %v534_v30  ;;  %v2579_v32 = vpop.f32.mrb[1].mxu1  ;;  %v1359_v27 = vld [vmem:[#allocation14] sm:$0xff] }
 0x355   :  { %v2732_v30 = vpack.c.bf16 %v1360_v28, %v1359_v27  ;;  %v1361_v32 = vld [vmem:[#allocation14 + $0x10] sm:$0xf] }
 0x356   :  { %v538_v34 = vmax.f32 %v535_v31, 0.0  ;;  %v1449_v27 = vld [vmem:[%s4143_s1 + $0x8] sm:$0xff] }
 0x358   :  { %2587 = vmatmul.mubr.msk.f32.vlgmr.msra.gmra.mrb[2].mxu0 %vm549_vm3, %v538_v34  ;;  %v1272_v34 = vld [vmem:[%s4142_s3] sm:$0xff] }
 0x359   :  { %2702 = vmatpush3.bf16.msra.mxu0 %v2701_v33  ;;  %2597 = vmatprep.mubr.msk.f32.mxu0 %vm3494_vm0, %v3495_v1  ;;  %v1358_v33 = vld [vmem:[#allocation5] sm:$0xff]  ;;  %v2726_v36 = vpack.c.bf16 %v1273_v35, %v1272_v34 }
 0x35a   :  { %2703 = vmatprep.subr.bf16.mxu0 %v3493_v0 }
 0x35d   :  { %2705 = vmatpush3.bf16.msra.mxu0 %v2704_v43  ;;  %v3914_v43 = vrot.slane %v824_v40, %v3910_v41 }
 0x35e   :  { %2711 = vmatprep.subr.bf16.mxu0 %v3838_v59 }
 0x42b   :  { %v619_v48 = vpop.f32.mrb[2].mxu0 }
 0x42c   :  { %v620_v49 = vadd.f32 %v2480_v47, %v619_v48  ;;  %v2588_v50 = vpop.f32.mrb[3].mxu0  ;;  %v844_v47 = vsub.s32 4, %v3855_v6 }
 0x42d   :  { %v3923_v50 = vrot.slane %v824_v40, %v840_v42 }
 0x42e   :  { %v623_v51 = vmax.f32 %v620_v49, 0.0  ;;  %v3935_v58 = vrot.slane %v824_v40, %v844_v47  ;;  %v2492_v47 = vld [vmem:[#allocation16] ss:$0 sm:$0xff] }
 0x430   :  { %2482 = vmatmul.mubr.msk.f32.vlgmr.msra.gmra.mrb[2].mxu1 %vm464_vm2, %v623_v51  ;;  %2598 = vmatmul.mubr.msk.f32.vlgmr.msra.gmra.mrb[4].mxu0 %vm464_vm2, %v623_v51  ;;  %v848_v51 = vsub.s32 5, %v3855_v6  ;;  %v2488_v6 = vld [vmem:[#allocation29] ss:$0 sm:$0xff] }
 0x431   :  { %933 = vmatprep.mubr.f32.mxu1 %v3495_v1  ;;  %1004 = vmatprep.mubr.f32.mxu0 %v3495_v1 }
 0x432   :  { %2709 = vmatpush1.bf16.msra.mxu1 %v3833_v55  ;;  %2713 = vmatpush1.bf16.msra.mxu0 %v3840_v60 }
 0x433   :  { %2715 = vmatprep.subr.bf16.mxu1 %v3846_v63  ;;  %2719 = vmatprep.subr.bf16.mxu0 %v3852_v4 }
 0x503   :  { %v3869_v14 = vpop.f32.mrb[2].mxu1  ;;  %v793_v16 = vpop.f32.mrb[4].mxu0 }
 0x504   :  { %v724_v17 = vpop.f32.mrb[3].mxu1  ;;  %v2599_v18 = vpop.f32.mrb[5].mxu0  ;;  %v794_v26 = vadd.f32 %v793_v16, %v649_v24 }
 0x505   :  { %v725_v21 = vadd.f32 %v724_v17, %v645_v10  ;;  %v3945_v10 = vrot.slane %v824_v40, %v848_v51 }
 0x506   :  { %v797_v31 = vmax.f32 %v794_v26, 0.0  ;;  %v1448_v26 = vld [vmem:[%s4143_s1] sm:$0xff] }
 0x507   :  { %2484 = vmatmul.mubr.msk.f32.vlgmr.msra.gmra.mrb[4].mxu1 %vm378_vm1, %v725_v21  ;;  %2485 = vmatmul.mubr.msk.f32.vlgmr.msra.gmra.mrb[6].mxu0 %vm378_vm1, %v725_v21  ;;  %v2735_v37 = vpack.c.bf16 %v1449_v27, %v1448_v26 }
 0x508   :  { %2717 = vmatpush1.bf16.msra.mxu1 %v3874_v19  ;;  %2721 = vmatpush1.bf16.msra.mxu0 %v3876_v20 }
 0x509   :  { %1075 = vmatprep.mubr.f32.mxu1 %v3495_v1  ;;  %1146 = vmatprep.mubr.f32.mxu0 %v3495_v1 }
 0x50a   :  { %2722 = vmatprep.subr.bf16.mxu1 %v3493_v0  ;;  %2725 = vmatprep.subr.bf16.mxu0 %v3493_v0 }
 0x50b   :  { %2486 = vmatmul.mubr.msk.f32.vlgmr.msra.gmra.mrb[6].mxu1 %vm378_vm1, %v725_v21  ;;  %2487 = vmatmul.mubr.msk.f32.vlgmr.msra.gmra.mrb[8].mxu0 %vm378_vm1, %v725_v21  ;;  %v3953_v21 = vrot.slane %v824_v40, %v852_v61 }
 0x50c   :  { %2724 = vmatpush3.bf16.msra.mxu1 %v2723_v25  ;;  %2606 = vmatprep.mubr.msk.f32.mxu1 %vm3494_vm0, %v3495_v1  ;;  %v3958_v25 = vrot.slane %v824_v40, %v856_v11  ;;  %v1451_v40 = vld [vmem:[%s4143_s1 + $0x18] sm:$0xff]  ;;  %v1534_v11 = vld [vmem:[#allocation19 + $0x8] sm:$0xff] }
 0x50d   :  { %2604 = vmatprep.subr.mxu1 %v3495_v1  ;;  %2617 = vmatprep.mubr.msk.f32.mxu0 %vm3494_vm0, %v3495_v1 }
 0x50e   :  { %2727 = vmatpush3.bf16.msra.mxu0 %v2726_v36 }
 0x50f   :  { %2728 = vmatprep.subr.bf16.mxu0 %v3493_v0 }
 0x510   :  { %2605 = vmatpush3.msra.mxu1 %v1190_v29 }
 0x511   :  { %2607 = vmatmul.mubr.msk.f32.vlgmr.msra.gmra.mrb[8].mxu1 %vm549_vm3, %v797_v31  ;;  %2731 = vmatprep.subr.bf16.mxu1 %v3493_v0 }
 0x512   :  { %2733 = vmatpush3.bf16.msra.mxu1 %v2732_v30  ;;  %2626 = vmatprep.mubr.msk.f32.mxu1 %vm3494_vm0, %v3495_v1 }
 0x513   :  { %2624 = vmatprep.subr.mxu1 %v3495_v1  ;;  %2730 = vmatpush3.bf16.msra.mxu0 %v2729_v39  ;;  %v1450_v39 = vld [vmem:[%s4143_s1 + $0x10] sm:$0xff] }
 0x514   :  { %2734 = vmatprep.subr.bf16.mxu0 %v3493_v0  ;;  %v2738_v51 = vpack.c.bf16 %v1451_v40, %v1450_v39 }
 0x516   :  { %2625 = vmatpush3.msk.msra.mxu1 %vm1373_vm4, %v1361_v32 }
 0x517   :  { %2627 = vmatmul.mubr.msk.f32.vlgmr.msra.gmra.mrb[10].mxu1 %vm1369_vm5, %v1358_v33  ;;  %2740 = vmatprep.subr.bf16.mxu1 %v3493_v0 }
 0x518   :  { %2646 = vmatprep.mubr.msk.f32.mxu1 %vm3494_vm0, %v3495_v1 }
 0x5da   :  { %v935_v48 = vpop.f32.mrb[4].mxu1  ;;  %v1006_v49 = vpop.f32.mrb[6].mxu0 }
 0x5db   :  { %v3927_v52 = vadd.f32 %v935_v48, %v3914_v43  ;;  %v937_v53 = vpop.f32.mrb[5].mxu1  ;;  %v1008_v54 = vpop.f32.mrb[7].mxu0  ;;  %v3930_v56 = vadd.f32 %v1006_v49, %v3917_v44 }
 0x5dc   :  { %v3933_v57 = vadd.f32 %v937_v53, %v3920_v45  ;;  %v3943_v3 = vadd.f32 %v1008_v54, %v3923_v50 }
 0x5dd   :  { %v1153_v62 = vmul.f32 %v3927_v52, %v3927_v52  ;;  %v1155_v16 = vmul.f32 %v3930_v56, %v3930_v56 }
 0x5de   :  { %v1154_v2 = vmul.f32 %v3933_v57, %v3933_v57  ;;  %v1077_v5 = vpop.f32.mrb[6].mxu1  ;;  %v1148_v9 = vpop.f32.mrb[8].mxu0  ;;  %v1156_v22 = vmul.f32 %v3943_v3, %v3943_v3 }
 0x5df   :  { %v1079_v12 = vpop.f32.mrb[7].mxu1  ;;  %v1150_v13 = vpop.f32.mrb[9].mxu0  ;;  %v3951_v18 = vadd.f32 %v1077_v5, %v3935_v58  ;;  %v1149_v30 = vadd.f32 %v1148_v9, %v3953_v21  ;;  %v1533_v9 = vld [vmem:[#allocation19] sm:$0xff] }
 0x5e0   :  { %v1161_v17 = vadd.f32 %v1154_v2, %v1153_v62  ;;  %v1080_v24 = vadd.f32 %v1079_v12, %v3945_v10  ;;  %v1151_v36 = vadd.f32 %v1150_v13, %v3958_v25  ;;  %v2741_v12 = vpack.c.bf16 %v1534_v11, %v1533_v9  ;;  %v1535_v13 = vld [vmem:[#allocation19 + $0x10] sm:$0xff] }
 0x5e1   :  { %v1157_v29 = vmul.f32 %v3951_v18, %v3951_v18  ;;  %v1159_v42 = vmul.f32 %v1149_v30, %v1149_v30  ;;  %v1628_v9 = vld [vmem:[#allocation23 + $0x58] sm:$0xff] }
 0x5e2   :  { %v1162_v23 = vadd.f32 %v1161_v17, %v1155_v16  ;;  %v1158_v35 = vmul.f32 %v1080_v24, %v1080_v24  ;;  %v1160_v53 = vmul.f32 %v1151_v36, %v1151_v36  ;;  %2742 = vmatpush3.bf16.msra.mxu1 %v2741_v12  ;;  %v1618_v16 = vld [vmem:[#allocation23 + $0x8] sm:$0xff]  ;;  %v1621_v17 = vld [vmem:[#allocation23 + $0x20] sm:$0xff]  ;;  %v2497_v12 = vld [vmem:[#allocation20] ss:$0 sm:$0xff] }
 0x5e3   :  { %2644 = vmatprep.subr.mxu1 %v3495_v1 }
 0x5e4   :  { %v1163_v28 = vadd.f32 %v1162_v23, %v1156_v22  ;;  %v1267_v31 = vpop.f32.mrb[8].mxu1  ;;  %v1617_v22 = vld [vmem:[#allocation23] sm:$0xff]  ;;  %v2743_v23 = vpack.c.bf16 %v1621_v17, %v1618_v16 }
 0x5e5   :  { %v1268_v32 = vadd.f32 %v2488_v6, %v1267_v31  ;;  %v2608_v33 = vpop.f32.mrb[9].mxu1  ;;  %v1620_v6 = vld [vmem:[#allocation23 + $0x18] sm:$0xff] }
 0x5e6   :  { %v1164_v34 = vadd.f32 %v1163_v28, %v1157_v29  ;;  %2645 = vmatpush3.msra.mxu1 %v1535_v13  ;;  %v2745_v26 = vpack.c.bf16 %v1620_v6, %v1617_v22 }
 0x5e7   :  { %v1271_v38 = vmax.f32 %v1268_v32, 0.0  ;;  %2751 = vmatprep.subr.bf16.mxu1 %v3493_v0 }
 0x5e8   :  { %v1165_v48 = vadd.f32 %v1164_v34, %v1158_v35 }
 0x5e9   :  { %2618 = vmatmul.mubr.msk.f32.vlgmr.msra.gmra.mrb[10].mxu0 %vm464_vm2, %v1271_v38 }
 0x5ea   :  { %2736 = vmatpush3.bf16.msra.mxu0 %v2735_v37  ;;  %v1443_v49 = vpop.f32.mrb[10].mxu1  ;;  %2637 = vmatprep.mubr.msk.f32.mxu0 %vm3494_vm0, %v3495_v1  ;;  %v1166_v54 = vadd.f32 %v1165_v48, %v1159_v42 }
 0x5eb   :  { %v1444_v61 = vadd.f32 %v2492_v47, %v1443_v49  ;;  %v2628_v62 = vpop.f32.mrb[11].mxu1  ;;  %2737 = vmatprep.subr.bf16.mxu0 %v3493_v0  ;;  %v1619_v47 = vld [vmem:[#allocation23 + $0x10] sm:$0xff] }
 0x5ec   :  { %v1167_v2 = vadd.f32 %v1166_v54, %v1160_v53  ;;  %v1627_v53 = vld [vmem:[#allocation23 + $0x50] sm:$0xff]  ;;  %v1626_v62 = vld [vmem:[#allocation23 + $0x48] sm:$0xff] }
 0x5ed   :  { %v1447_v5 = vmax.f32 %v1444_v61, 0.0  ;;  %v1623_v61 = vld [vmem:[#allocation23 + $0x30] sm:$0xff] }
 0x5ee   :  { %2739 = vmatpush3.bf16.msra.mxu0 %v2738_v51  ;;  %1168 = vadd.xlane.f32.xlu1 %v1167_v2  ;;  %v1624_v51 = vld [vmem:[#allocation23 + $0x38] sm:$0xff]  ;;  %v1625_v2 = vld [vmem:[#allocation23 + $0x40] sm:$0xff] }
 0x5ef   :  { %2744 = vmatprep.subr.bf16.mxu0 %v2743_v23  ;;  %v2747_v54 = vpack.c.bf16 %v1627_v53, %v1624_v51  ;;  %v2755_v11 = vpack.c.bf16 %v1628_v9, %v1625_v2 }
 0x5f1   :  { %2638 = vmatmul.mubr.msk.f32.vlgmr.msra.gmra.mrb[12].mxu0 %vm464_vm2, %v1447_v5  ;;  %v2749_v5 = vpack.c.bf16 %v1626_v62, %v1623_v61 }
 0x5f2   :  { %1713 = vmatprep.mubr.f32.mxu0 %v3495_v1  ;;  %2746 = vmatpush1.bf16.msra.mxu0 %v2745_v26 }
 0x5f3   :  { %2748 = vmatprep.subr.bf16.mxu0 %v2747_v54 }
 0x5f6   :  { %2750 = vmatpush1.bf16.msra.mxu0 %v2749_v5 }
 0x5f7   :  { %2758 = vmatprep.subr.bf16.mxu0 %v3823_v46  ;;  %v1629_v46 = vld [vmem:[#allocation25] sm:$0x7] }
 0x5f8   :  { %v1638_v23 = vrot.slane %v1629_v46, %v3858_v7 }
 0x67b   :  { %v1169_v27 = vpop.xlane.xlu1 %1168 }
 0x67c   :  { %v1170_v28 = vmax.f32 %v1169_v27, 1e-24 }
 0x67e   :  { %2847 = vrsqrt.f32 %v1170_v28 }
 0x688   :  { %v2848_v29 = vpop.eup %2847 }
 0x689   :  { %v1172_v31 = vmul.f32 %v2848_v29, %v3927_v52  ;;  %v1173_v32 = vmul.f32 %v2848_v29, %v3933_v57  ;;  %v1174_v33 = vmul.f32 %v2848_v29, %v3930_v56  ;;  %v1175_v34 = vmul.f32 %v2848_v29, %v3943_v3  ;;  %v2490_v52 = vld [vmem:[%s4144_s24] ss:$0 sm:$0xff]  ;;  %v2495_v3 = vld [vmem:[#allocation17] ss:$0 sm:$0xff] }
 0x68a   :  { %v1176_v35 = vmul.f32 %v2848_v29, %v3951_v18  ;;  %v1177_v37 = vmul.f32 %v2848_v29, %v1080_v24  ;;  %v1178_v38 = vmul.f32 %v2848_v29, %v1149_v30  ;;  %v1179_v39 = vmul.f32 %v2848_v29, %v1151_v36  ;;  %v1622_v18 = vld [vmem:[#allocation23 + $0x28] sm:$0xff] }
 0x68b   :  { %1180 = vst [vmem:[#allocation38] sm:$0xff] %v1172_v31  ;;  %1181 = vst [vmem:[#allocation38 + $0x8] sm:$0xff] %v1173_v32  ;;  %v2752_v48 = vpack.c.bf16 %v1622_v18, %v1619_v47  ;;  %v2181_v31 = vld [vmem:[#allocation31] sm:$0xff]  ;;  %v2182_v32 = vld [vmem:[#allocation31 + $0x8] sm:$0xff] }
 0x68c   :  { %1182 = vst [vmem:[#allocation38 + $0x10] sm:$0xff] %v1174_v33  ;;  %1183 = vst [vmem:[#allocation38 + $0x18] sm:$0xff] %v1175_v34  ;;  %v2774_v7 = vpack.c.bf16 %v2182_v32, %v2181_v31  ;;  %v2267_v33 = vld [vmem:[%s4145_s4 + $0x10] sm:$0xff]  ;;  %v2268_v34 = vld [vmem:[%s4145_s4 + $0x18] sm:$0xff] }
 0x68d   :  { %1184 = vst [vmem:[#allocation38 + $0x20] sm:$0xff] %v1176_v35  ;;  %1185 = vst [vmem:[#allocation38 + $0x28] sm:$0xff] %v1177_v37  ;;  %v2780_v35 = vpack.c.bf16 %v2268_v34, %v2267_v33 }
 0x68e   :  { %1186 = vst [vmem:[#allocation38 + $0x30] sm:$0xff] %v1178_v38  ;;  %1187 = vst [vmem:[#allocation38 + $0x38] sm:$0xff] %v1179_v39 }
 0x6bc   :  { %v1352_v40 = vpop.f32.mrb[10].mxu0 }
 0x6bd   :  { %v1353_v57 = vadd.f32 %v2490_v52, %v1352_v40  ;;  %v2619_v42 = vpop.f32.mrb[11].mxu0 }
 0x6bf   :  { %v1356_v56 = vmax.f32 %v1353_v57, 0.0 }
 0x6c1   :  { %1357 = vst [vmem:[#allocation35] sm:$0xff] %v1356_v56 }
 0x6c4   :  { %v1528_v24 = vpop.f32.mrb[12].mxu0 }
 0x6c5   :  { %v1529_v30 = vadd.f32 %v2495_v3, %v1528_v24  ;;  %v2639_v36 = vpop.f32.mrb[13].mxu0 }
 0x6c7   :  { %v1532_v49 = vmax.f32 %v1529_v30, 0.0 }
 0x6c9   :  { %2647 = vmatmul.mubr.msk.f32.vlgmr.msra.gmra.mrb[12].mxu1 %vm549_vm3, %v1532_v49 }
 0x6ca   :  { %2753 = vmatpush3.bf16.msra.mxu1 %v2752_v48  ;;  %2657 = vmatprep.mubr.msk.f32.mxu1 %vm3494_vm0, %v3495_v1 }
 0x6cb   :  { %2754 = vmatprep.subr.bf16.mxu1 %v3493_v0 }
 0x6ce   :  { %2756 = vmatpush3.bf16.msra.mxu1 %v2755_v11 }
 0x6cf   :  { %2762 = vmatprep.subr.bf16.mxu1 %v3838_v59  ;;  %v1634_v59 = vrot.slane %v1629_v46, %v3910_v41 }
 0x79c   :  { %v1612_v13 = vpop.f32.mrb[12].mxu1 }
 0x79d   :  { %v1613_v16 = vadd.f32 %v2497_v12, %v1612_v13  ;;  %v2648_v17 = vpop.f32.mrb[13].mxu1 }
 0x79f   :  { %v1616_v22 = vmax.f32 %v1613_v16, 0.0 }
 0x7a1   :  { %2499 = vmatmul.mubr.msk.f32.vlgmr.msra.gmra.mrb[14].mxu0 %vm464_vm2, %v1616_v22  ;;  %2658 = vmatmul.mubr.msk.f32.vlgmr.msra.gmra.mrb[14].mxu1 %vm464_vm2, %v1616_v22 }
 0x7a2   :  { %2760 = vmatpush1.bf16.msra.mxu0 %v3833_v55  ;;  %2764 = vmatpush1.bf16.msra.mxu1 %v3840_v60  ;;  %v641_v55 = vrot.slane %v3861_v8, %v3910_v41 }
 0x7a3   :  { %1926 = vmatprep.mubr.f32.mxu0 %v3495_v1  ;;  %1997 = vmatprep.mubr.f32.mxu1 %v3495_v1 }
 0x7a4   :  { %2766 = vmatprep.subr.bf16.mxu0 %v3846_v63  ;;  %2770 = vmatprep.subr.bf16.mxu1 %v3852_v4  ;;  %v1642_v63 = vrot.slane %v1629_v46, %v3872_v15  ;;  %v723_v4 = vadd.f32 %v3869_v14, %v641_v55  ;;  %v2183_v14 = vld [vmem:[#allocation31 + $0x10] sm:$0xff] }
 0x874   :  { %v1715_v6 = vpop.f32.mrb[14].mxu0  ;;  %v1786_v26 = vpop.f32.mrb[14].mxu1 }
 0x875   :  { %v1716_v27 = vadd.f32 %v1715_v6, %v1634_v59  ;;  %v1717_v60 = vpop.f32.mrb[15].mxu0  ;;  %v2659_v28 = vpop.f32.mrb[15].mxu1  ;;  %v1787_v8 = vadd.f32 %v1786_v26, %v1642_v63 }
 0x876   :  { %v1718_v29 = vadd.f32 %v1717_v60, %v1638_v23 }
 0x877   :  { %1791 = vmax.xlane.f32.xlu0 %v1716_v27  ;;  %v1790_v15 = vmax.f32 %v1787_v8, 0.0 }
 0x878   :  { %2501 = vmatmul.mubr.msk.f32.vlgmr.msra.gmra.mrb[16].mxu0 %vm378_vm1, %v1718_v29  ;;  %2502 = vmatmul.mubr.msk.f32.vlgmr.msra.gmra.mrb[16].mxu1 %vm378_vm1, %v1718_v29 }
 0x879   :  { %2768 = vmatpush1.bf16.msra.mxu0 %v3874_v19  ;;  %2772 = vmatpush1.bf16.msra.mxu1 %v3876_v20  ;;  %v2265_v19 = vld [vmem:[%s4145_s4] sm:$0xff]  ;;  %v2266_v20 = vld [vmem:[%s4145_s4 + $0x8] sm:$0xff] }
 0x87a   :  { %2068 = vmatprep.mubr.f32.mxu0 %v3495_v1  ;;  %2139 = vmatprep.mubr.f32.mxu1 %v3495_v1  ;;  %v2777_v41 = vpack.c.bf16 %v2266_v20, %v2265_v19 }
 0x87b   :  { %2773 = vmatprep.subr.bf16.mxu0 %v3493_v0  ;;  %798 = vmax.xlane.f32.xlu0 %v723_v4 }
 0x87c   :  { %2503 = vmatmul.mubr.msk.f32.vlgmr.msra.gmra.mrb[18].mxu0 %vm378_vm1, %v1718_v29  ;;  %2504 = vmatmul.mubr.msk.f32.vlgmr.msra.gmra.mrb[18].mxu1 %vm378_vm1, %v1718_v29 }
 0x87d   :  { %2775 = vmatpush3.bf16.msra.mxu0 %v2774_v7  ;;  %2666 = vmatprep.mubr.msk.f32.mxu0 %vm3494_vm0, %v3495_v1 }
 0x87e   :  { %2664 = vmatprep.subr.mxu0 %v3495_v1  ;;  %2776 = vmatprep.subr.bf16.mxu1 %v3493_v0 }
 0x87f   :  { %2677 = vmatprep.mubr.msk.f32.mxu1 %vm3494_vm0, %v3495_v1  ;;  %2778 = vmatpush3.bf16.msra.mxu1 %v2777_v41 }
 0x880   :  { %2779 = vmatprep.subr.bf16.mxu1 %v3493_v0 }
 0x881   :  { %2665 = vmatpush3.msra.mxu0 %v2183_v14 }
 0x882   :  { %2667 = vmatmul.mubr.msk.f32.vlgmr.msra.gmra.mrb[20].mxu0 %vm549_vm3, %v1790_v15 }
 0x883   :  { %2781 = vmatpush3.bf16.msra.mxu1 %v2780_v35 }
 0x904   :  { %v1792_v37 = vpop.xlane.xlu0 %1791 }
 0x905   :  { %v1793_v38 = vsub.f32 %v1716_v27, %v1792_v37 }
 0x907   :  { %v1794_v39 = vmul.f32 1.442695, %v1793_v38 }
 0x908   :  { %v799_v3 = vpop.xlane.xlu0 %798 }
 0x909   :  { %2849 = vpow2.f32 %v1794_v39  ;;  %v800_v48 = vsub.f32 %v723_v4, %v799_v3 }
 0x90b   :  { %v801_v2 = vmul.f32 1.442695, %v800_v48 }
 0x90d   :  { %2851 = vpow2.f32 %v801_v2 }
 0x913   :  { %v2850_v52 = vpop.eup %2849 }
 0x914   :  { %1796 = vadd.xlane.f32.xlu0 %v2850_v52 }
 0x917   :  { %v2852_v26 = vpop.eup %2851 }
 0x94b   :  { %v1928_v1 = vpop.f32.mrb[16].mxu0  ;;  %v1999_v40 = vpop.f32.mrb[16].mxu1 }
 0x94c   :  { %v4024_v57 = vadd.f32 %v1928_v1, %v3914_v43  ;;  %v1930_v42 = vpop.f32.mrb[17].mxu0  ;;  %v2001_v56 = vpop.f32.mrb[17].mxu1  ;;  %v4027_v0 = vadd.f32 %v1999_v40, %v3917_v44 }
 0x94d   :  { %v4030_v47 = vadd.f32 %v1930_v42, %v3920_v45  ;;  %v4037_v30 = vadd.f32 %v2001_v56, %v3923_v50  ;;  %v2505_v50 = vld [vmem:[%s4146_s2] ss:$0 sm:$0xff] }
 0x94e   :  { %v2146_v18 = vmul.f32 %v4024_v57, %v4024_v57  ;;  %v2148_v44 = vmul.f32 %v4027_v0, %v4027_v0 }
 0x94f   :  { %v2147_v24 = vmul.f32 %v4030_v47, %v4030_v47  ;;  %v2070_v43 = vpop.f32.mrb[18].mxu0  ;;  %v2141_v36 = vpop.f32.mrb[18].mxu1  ;;  %v2149_v54 = vmul.f32 %v4037_v30, %v4037_v30 }
 0x950   :  { %v2072_v49 = vpop.f32.mrb[19].mxu0  ;;  %v2143_v51 = vpop.f32.mrb[19].mxu1  ;;  %v4042_v45 = vadd.f32 %v2070_v43, %v3935_v58  ;;  %v4053_v11 = vadd.f32 %v2141_v36, %v3953_v21 }
 0x951   :  { %v2154_v53 = vadd.f32 %v2147_v24, %v2146_v18  ;;  %v4047_v62 = vadd.f32 %v2072_v49, %v3945_v10  ;;  %v4058_v22 = vadd.f32 %v2143_v51, %v3958_v25 }
 0x952   :  { %v2150_v9 = vmul.f32 %v4042_v45, %v4042_v45  ;;  %v2152_v46 = vmul.f32 %v4053_v11, %v4053_v11 }
 0x953   :  { %v2155_v61 = vadd.f32 %v2154_v53, %v2148_v44  ;;  %v2151_v17 = vmul.f32 %v4047_v62, %v4047_v62  ;;  %v2153_v21 = vmul.f32 %v4058_v22, %v4058_v22 }
 0x955   :  { %v2156_v5 = vadd.f32 %v2155_v61, %v2149_v54  ;;  %v2260_v12 = vpop.f32.mrb[20].mxu0 }
 0x956   :  { %v2261_v13 = vadd.f32 %v2505_v50, %v2260_v12  ;;  %v2668_v58 = vpop.f32.mrb[21].mxu0 }
 0x957   :  { %v2157_v16 = vadd.f32 %v2156_v5, %v2150_v9 }
 0x958   :  { %v2264_v10 = vmax.f32 %v2261_v13, 0.0 }
 0x959   :  { %v2158_v59 = vadd.f32 %v2157_v16, %v2151_v17 }
 0x95a   :  { %2678 = vmatmul.mubr.msk.f32.vlgmr.msra.gmra.mrb[20].mxu1 %vm464_vm2, %v2264_v10 }
 0x95b   :  { %v2159_v23 = vadd.f32 %v2158_v59, %v2152_v46 }
 0x95d   :  { %v2160_v6 = vadd.f32 %v2159_v23, %v2153_v21 }
 0x95f   :  { %2161 = vadd.xlane.f32.xlu1 %v2160_v6 }
 0x963   :  { %803 = vadd.xlane.f32.xlu1 %v2852_v26 }
 0x9a1   :  { %v1797_v55 = vpop.xlane.xlu0 %1796 }
 0x9a2   :  { %2853 = vrcp.f32 %v1797_v55 }
 0x9ac   :  { %v2854_v25 = vpop.eup %2853 }
 0x9ad   :  { %v1799_v27 = vmul.f32 %v2854_v25, %v2850_v52 }
 0x9af   :  { %1800 = vst [vmem:[#allocation33] sm:$0xff] %v1799_v27 }
 0x9b0   :  { %3288 = shalt.err (!%p3285_p2)
}
 0x9b1   :  { %s4147_s5 = sld [smem:[#allocation70_spill]] }
 0x9b7   :  { %s3289_s11 = scalar_lea.hbm %s4147_s5, 128 }
 0x9b8   :  { %p3290_p3 = scmp.ne.s32.totalorder %s4147_s5, %s3289_s11  ;;  %p3293_p4 = scmp.lt.u32.totalorder %s3289_s11, %s4147_s5 }
 0x9ba   :  { %p3295_p5 = pnand %p3293_p4, %p3290_p3 }
 0x9bc   :  { %3298 = shalt.err (!%p3295_p5)
}
 0x9bd   :  { %2370 = dma.vmem_to_hbm [thread:$0]  %s2368_s7, 128, %s4147_s5, [#allocation34]  }
 0x9be   :  { %s3497_s15 = smov [#allocation35]  }
 0x9bf   :  { %s2377_s16 = sshll.u32 %s3497_s15, 4  ;;  %s2378_s16 = int_to_ptr.vmem [resolvable:$true] %s2377_s16 }
 0x9c0   :  { %s3299_s13 = scalar_lea.vmem %s2378_s16, 128  ;;  %p3304_p7 = scmp.lt.s32.totalorder %s2378_s16, %s2378_s16 }
 0x9c1   :  { %p3300_p6 = scmp.ne.s32.totalorder %s2378_s16, %s3299_s13  ;;  %p3305_p8 = scmp.lt.s32.totalorder %s3299_s13, %s3299_s13 }
 0x9c3   :  { %p3306_p9 = por %p3305_p8, %p3304_p7 }
 0x9c5   :  { %p3307_p10 = pnand %p3306_p9, %p3300_p6 }
 0x9c7   :  { %3310 = shalt.err (!%p3307_p10)
}
 0x9c8   :  { %s3311_s18 = scalar_lea.hbm %s3660_s19, 128 }
 0x9c9   :  { %p3312_p11 = scmp.ne.s32.totalorder %s3660_s19, %s3311_s18  ;;  %p3315_p12 = scmp.lt.u32.totalorder %s3311_s18, %s3660_s19 }
 0x9cb   :  { %p3317_p13 = pnand %p3315_p12, %p3312_p11 }
 0x9cd   :  { %3320 = shalt.err (!%p3317_p13)
}
 0x9ce   :  { %2380 = dma.vmem_to_hbm [thread:$0]  %s2378_s16, 128, %s3660_s19, [#allocation34]  }
 0x9cf   :  { %s3498_s22 = smov [#allocation39]   ;;  %s3499_s29 = smov [#allocation32]  }
 0x9d0   :  { %s2407_s27 = sshll.u32 %s3498_s22, 4  ;;  %s2357_s6 = sshll.u32 %s3499_s29, 4  ;;  %s2408_s27 = int_to_ptr.vmem [resolvable:$true] %s2407_s27  ;;  %s4081_s6 = int_to_ptr.vmem [resolvable:$true] %s2357_s6 }
 0x9d1   :  { %s3321_s19 = scalar_lea.vmem %s2408_s27, 1024  ;;  %p3326_p1 = scmp.lt.s32.totalorder %s2408_s27, %s2408_s27 }
 0x9d2   :  { %p3322_p0 = scmp.ne.s32.totalorder %s2408_s27, %s3321_s19  ;;  %p3327_p2 = scmp.lt.s32.totalorder %s3321_s19, %s3321_s19 }
 0x9d4   :  { %p3328_p3 = por %p3327_p2, %p3326_p1 }
 0x9d6   :  { %p3329_p4 = pnand %p3328_p3, %p3322_p0 }
 0x9ec   :  { %v2162_v60 = vpop.xlane.xlu1 %2161 }
 0x9ed   :  { %v2163_v28 = vmax.f32 %v2162_v60, 1e-24 }
 0x9ef   :  { %2855 = vrsqrt.f32 %v2163_v28 }
 0x9f0   :  { %v804_v29 = vpop.xlane.xlu1 %803 }
 0x9f1   :  { %2857 = vrcp.f32 %v804_v29 }
 0x9f9   :  { %v2856_v31 = vpop.eup %2855 }
 0x9fa   :  { %v2165_v32 = vmul.f32 %v2856_v31, %v4024_v57  ;;  %v2166_v63 = vmul.f32 %v2856_v31, %v4030_v47  ;;  %v2167_v4 = vmul.f32 %v2856_v31, %v4027_v0  ;;  %v2168_v7 = vmul.f32 %v2856_v31, %v4037_v30 }
 0x9fb   :  { %v2858_v8 = vpop.eup %2857  ;;  %v2169_v14 = vmul.f32 %v2856_v31, %v4042_v45  ;;  %v2170_v15 = vmul.f32 %v2856_v31, %v4047_v62  ;;  %v2171_v19 = vmul.f32 %v2856_v31, %v4053_v11  ;;  %v2172_v20 = vmul.f32 %v2856_v31, %v4058_v22 }
 0x9fc   :  { %v806_v41 = vmul.f32 %v2858_v8, %v2852_v26  ;;  %2173 = vst [vmem:[#allocation39] sm:$0xff] %v2165_v32  ;;  %2174 = vst [vmem:[#allocation39 + $0x8] sm:$0xff] %v2166_v63 }
 0x9fd   :  { %2175 = vst [vmem:[#allocation39 + $0x10] sm:$0xff] %v2167_v4  ;;  %2176 = vst [vmem:[#allocation39 + $0x18] sm:$0xff] %v2168_v7 }
 0x9fe   :  { %2177 = vst [vmem:[#allocation39 + $0x20] sm:$0xff] %v2169_v14  ;;  %2178 = vst [vmem:[#allocation39 + $0x28] sm:$0xff] %v2170_v15 }
 0x9ff   :  { %2179 = vst [vmem:[#allocation39 + $0x30] sm:$0xff] %v2171_v19  ;;  %2180 = vst [vmem:[#allocation39 + $0x38] sm:$0xff] %v2172_v20 }
 0xa00   :  { %807 = vst [vmem:[#allocation32] sm:$0xff] %v806_v41 }
 0xa01   :  { %3332 = shalt.err (!%p3329_p4)
}
 0xa02   :  { %s3333_s23 = scalar_lea.hbm %s3675_s30, 1024 }
 0xa03   :  { %p3334_p5 = scmp.ne.s32.totalorder %s3675_s30, %s3333_s23  ;;  %p3337_p6 = scmp.lt.u32.totalorder %s3333_s23, %s3675_s30 }
 0xa05   :  { %p3339_p7 = pnand %p3337_p6, %p3334_p5 }
 0xa07   :  { %3342 = shalt.err (!%p3339_p7)
}
 0xa08   :  { %2410 = dma.vmem_to_hbm [thread:$0]  %s2408_s27, 1024, %s3675_s30, [#allocation40]  }
 0xa09   :  { %s3343_s26 = scalar_lea.vmem %s4081_s6, 128  ;;  %p3348_p9 = scmp.lt.s32.totalorder %s4081_s6, %s4081_s6 }
 0xa0a   :  { %p3344_p8 = scmp.ne.s32.totalorder %s4081_s6, %s3343_s26  ;;  %p3349_p10 = scmp.lt.s32.totalorder %s3343_s26, %s3343_s26 }
 0xa0c   :  { %p3350_p11 = por %p3349_p10, %p3348_p9 }
 0xa0e   :  { %p3351_p12 = pnand %p3350_p11, %p3344_p8 }
 0xa10   :  { %3354 = shalt.err (!%p3351_p12)
}
 0xa11   :  { %s4148_s25 = sld [smem:[#allocation69_spill]] }
 0xa17   :  { %s3355_s8 = scalar_lea.hbm %s4148_s25, 128 }
 0xa18   :  { %p3356_p13 = scmp.ne.s32.totalorder %s4148_s25, %s3355_s8  ;;  %p3359_p0 = scmp.lt.u32.totalorder %s3355_s8, %s4148_s25 }
 0xa1a   :  { %p3361_p1 = pnand %p3359_p0, %p3356_p13 }
 0xa1c   :  { %3364 = shalt.err (!%p3361_p1)
}
 0xa1d   :  { %s4149_s9 = sld [smem:[#allocation68_spill]]  ;;  %s3500_s30 = smov [#allocation36]  }
 0xa1e   :  { %2360 = dma.vmem_to_hbm [thread:$0]  %s4081_s6, 128, %s4148_s25, [#allocation4]  }
 0xa1f   :  { %s2387_s20 = sshll.u32 %s3500_s30, 4  ;;  %s3501_s17 = smov [#allocation38]   ;;  %s2388_s20 = int_to_ptr.vmem [resolvable:$true] %s2387_s20 }
 0xa20   :  { %s2397_s0 = sshll.u32 %s3501_s17, 4  ;;  %s3365_s28 = scalar_lea.vmem %s2388_s20, 128  ;;  %s2398_s0 = int_to_ptr.vmem [resolvable:$true] %s2397_s0 }
 0xa21   :  { %p3366_p2 = scmp.ne.s32.totalorder %s2388_s20, %s3365_s28  ;;  %p3370_p3 = scmp.lt.s32.totalorder %s2388_s20, %s2388_s20 }
 0xa22   :  { %p3371_p4 = scmp.lt.s32.totalorder %s3365_s28, %s3365_s28 }
 0xa23   :  { %v2507_v33 = vld [vmem:[%s4149_s9] ss:$0 sm:$0xff] }
 0xa24   :  { %p3372_p5 = por %p3371_p4, %p3370_p3 }
 0xa26   :  { %p3373_p6 = pnand %p3372_p5, %p3366_p2 }
 0xa2d   :  { %v2345_v34 = vpop.f32.mrb[20].mxu1 }
 0xa2e   :  { %v2346_v35 = vadd.f32 %v2507_v33, %v2345_v34  ;;  %v2679_v37 = vpop.f32.mrb[21].mxu1 }
 0xa30   :  { %v2349_v38 = vmax.f32 %v2346_v35, 0.0 }
 0xa32   :  { %2350 = vst [vmem:[#allocation36] sm:$0xff] %v2349_v38 }
 0xa33   :  { %3376 = shalt.err (!%p3373_p6)
}
 0xa34   :  { %s3377_s3 = scalar_lea.hbm %s3665_s12, 128 }
 0xa35   :  { %p3378_p7 = scmp.ne.s32.totalorder %s3665_s12, %s3377_s3  ;;  %p3381_p8 = scmp.lt.u32.totalorder %s3377_s3, %s3665_s12 }
 0xa37   :  { %p3383_p9 = pnand %p3381_p8, %p3378_p7 }
 0xa39   :  { %3386 = shalt.err (!%p3383_p9)
}
 0xa3a   :  { %2390 = dma.vmem_to_hbm [thread:$0]  %s2388_s20, 128, %s3665_s12, [#allocation37]  }
 0xa3b   :  { %s3387_s1 = scalar_lea.vmem %s2398_s0, 1024  ;;  %p3392_p11 = scmp.lt.s32.totalorder %s2398_s0, %s2398_s0 }
 0xa3c   :  { %p3388_p10 = scmp.ne.s32.totalorder %s2398_s0, %s3387_s1  ;;  %p3393_p12 = scmp.lt.s32.totalorder %s3387_s1, %s3387_s1 }
 0xa3e   :  { %p3394_p13 = por %p3393_p12, %p3392_p11 }
 0xa40   :  { %p3395_p0 = pnand %p3394_p13, %p3388_p10 }
 0xa42   :  { %3398 = shalt.err (!%p3395_p0)
}
 0xa43   :  { %s3399_s24 = scalar_lea.hbm %s3670_s21, 1024 }
 0xa44   :  { %p3400_p1 = scmp.ne.s32.totalorder %s3670_s21, %s3399_s24  ;;  %p3403_p2 = scmp.lt.u32.totalorder %s3399_s24, %s3670_s21 }
 0xa46   :  { %p3405_p3 = pnand %p3403_p2, %p3400_p1 }
 0xa48   :  { %3408 = shalt.err (!%p3405_p3)
}
 0xa49   :  { %2400 = dma.vmem_to_hbm [thread:$0]  %s2398_s0, 1024, %s3670_s21, [#allocation37]  }
 0xa4a   :  { %3429 = dma.done.wait [#allocation4], 128  }
 0xa4b   :  { %3430 = vsyncadd [#allocation4], 4294967168 }
 0xa4c   :  { %3431 = dma.done.wait [#allocation34], 256  }
 0xa4d   :  { %3432 = vsyncadd [#allocation34], 4294967040 }
 0xa4e   :  { %3433 = dma.done.wait [#allocation37], 1152  }
 0xa4f   :  { %3434 = vsyncadd [#allocation37], 4294966144 }
 0xa50   :  { %3435 = dma.done.wait [#allocation40], 1024  }
 0xa51   :  { %3436 = vsyncadd [#allocation40], 4294966272 }
 0xa52   :  { %2429 = vsyncpa [#allocation3], 1 }
 0xa53   :  { %2430 = vsyncpa [#allocation6], 1 }
 0xa54   :  { %2431 = vsyncpa [#allocation9], 1 }
 0xa55   :  { %2432 = vsyncpa [#allocation12], 1 }
 0xa56   :  { %2433 = vsyncpa [#allocation15], 1 }
 0xa57   :  { %2434 = vsyncpa [#allocation18], 1 }
 0xa58   :  { %2435 = vsyncpa [#allocation21], 1 }
 0xa59   :  { %2436 = vsyncpa [#allocation24], 1 }
 0xa5a   :  { %2437 = vsyncpa [#allocation27], 1 }
 0xa5b   :  { %2438 = vsyncpa [#allocation30], 1 }
 0xa5c   :  { %2439 = vsyncpa [#allocation4], 1 }
 0xa5d   :  { %2440 = vsyncpa [#allocation34], 1 }
 0xa5e   :  { %2441 = vsyncpa [#allocation37], 1 }
 0xa5f   :  { %2442 = vsyncpa [#allocation40], 1 }

</bundles_post_ra>
